<compile_context>
chip_gen: v7x
topology: tpu7x:2x2x1
jax: 0.10.0
libtpu: 0.0.40
codegen_flags: <defaults>
</compile_context>

<pallas_src>
import math
import jax
import jax.numpy as jnp
from jax.experimental import pallas as pl
from jax.experimental.pallas import tpu as pltpu

# ---------------- small synthetic BERT config ----------------
SRC_LEN = 8
BATCH = 2
HIDDEN = 32
NUM_HEADS = 2
HEAD_DIM = HIDDEN // NUM_HEADS
INTERMEDIATE = 64
NUM_LAYERS = 2
VOCAB = 64
TYPE_VOCAB = 2
MAX_POS = 16
NUM_LABELS = 3
LN_EPS = 1e-12

QKV_PAD = 128          # fused Q|K|V output width, zero-padded to a full lane vreg
CLS_PAD = 128          # classifier output width, zero-padded (real logits in [:NUM_LABELS])
MXU_DTYPE = jnp.bfloat16   # matmul-input dtype; accumulation stays f32


def _layer_norm(x, gamma, beta):
    mu = jnp.mean(x, axis=-1, keepdims=True)
    var = jnp.mean((x - mu) ** 2, axis=-1, keepdims=True)
    return (x - mu) * jax.lax.rsqrt(var + LN_EPS) * gamma + beta


def _gelu(x):
    # exact GELU (erf), matching torch.nn.GELU default
    return 0.5 * x * (1.0 + jax.lax.erf(x * (1.0 / math.sqrt(2.0))))


def bert_cls_kernel(emb_ref, maskb_ref,
                    ln_e_g_ref, ln_e_b_ref,
                    wqkv_ref, bqkv_ref, wo_ref, bo_ref, ln1g_ref, ln1b_ref,
                    w1_ref, b1_ref, w2_ref, b2_ref, ln2g_ref, ln2b_ref,
                    pw_ref, pb_ref, cw_ref, cb_ref,
                    logits_ref):
    scale = 1.0 / math.sqrt(HEAD_DIM)

    # embedding LayerNorm (+ dropout == identity in eval)
    x = _layer_norm(emb_ref[0], ln_e_g_ref[...], ln_e_b_ref[...])        # [S, H] f32

    # hoisted key-padding bias: broadcast once to the score shape [NH, S, S]
    mask_ss = jnp.broadcast_to(maskb_ref[...], (NUM_HEADS, SRC_LEN, SRC_LEN))

    for l in range(NUM_LAYERS):                 # static layer unroll (tiny config)
        # ---- fused Q|K|V projection: one lane-dense [S,H] @ [H,128] matmul ----
        qkv = jnp.dot(x.astype(MXU_DTYPE), wqkv_ref[l],
                      preferred_element_type=jnp.float32) + bqkv_ref[l]   # [S, 128] f32
        q = qkv[:, 0 * HIDDEN:1 * HIDDEN] * scale
        k = qkv[:, 1 * HIDDEN:2 * HIDDEN]
        v = qkv[:, 2 * HIDDEN:3 * HIDDEN]

        # head-major layout [NH, S, HD]: all heads run as one batched contraction
        qh = jnp.stack([q[:, h * HEAD_DIM:(h + 1) * HEAD_DIM] for h in range(NUM_HEADS)], axis=0)
        kh = jnp.stack([k[:, h * HEAD_DIM:(h + 1) * HEAD_DIM] for h in range(NUM_HEADS)], axis=0)
        vh = jnp.stack([v[:, h * HEAD_DIM:(h + 1) * HEAD_DIM] for h in range(NUM_HEADS)], axis=0)

        s = jnp.einsum('hqd,hkd->hqk', qh.astype(MXU_DTYPE), kh.astype(MXU_DTYPE),
                       preferred_element_type=jnp.float32)                # [NH, S, S]
        s = s + mask_ss                                                   # key padding mask
        s = s - jnp.max(s, axis=-1, keepdims=True)
        p = jnp.exp(s)
        p = p * pl.reciprocal(jnp.sum(p, axis=-1, keepdims=True), approx=True)  # attn dropout == identity
        ctx = jnp.einsum('hqk,hkd->hqd', p.astype(MXU_DTYPE), vh.astype(MXU_DTYPE),
                         preferred_element_type=jnp.float32)              # [NH, S, HD]

        # output projection with the head-concat folded in: attn = sum_h ctx[h] @ Wo[h] + bo
        attn = jnp.zeros((SRC_LEN, HIDDEN), jnp.float32)
        for h in range(NUM_HEADS):
            attn = attn + jnp.dot(ctx[h].astype(MXU_DTYPE), wo_ref[l, h],
                                  preferred_element_type=jnp.float32)
        attn = attn + bo_ref[l]
        x = _layer_norm(x + attn, ln1g_ref[l], ln1b_ref[l])

        # ---- feed-forward (GELU in f32) ----
        hmid = _gelu(jnp.dot(x.astype(MXU_DTYPE), w1_ref[l],
                             preferred_element_type=jnp.float32) + b1_ref[l])
        y = jnp.dot(hmid.astype(MXU_DTYPE), w2_ref[l],
                    preferred_element_type=jnp.float32) + b2_ref[l]
        x = _layer_norm(x + y, ln2g_ref[l], ln2b_ref[l])

    # ---- pooler: first token, dense + tanh; dropout == identity; classifier ----
    # TODO(synk): [1,H] GEMV uses one MXU row; negligible at this size, batch it if shapes grow.
    first = x[0:1, :]                                                     # [1, H]
    pooled = jnp.tanh(jnp.dot(first.astype(MXU_DTYPE), pw_ref[...],
                              preferred_element_type=jnp.float32) + pb_ref[...])   # [1, H]
    logits = jnp.dot(pooled.astype(MXU_DTYPE), cw_ref[...],
                     preferred_element_type=jnp.float32) + cb_ref[...]              # [1, CLS_PAD]
    logits_ref[...] = logits.reshape(1, 1, CLS_PAD)


# Kernel-layout parameter order (after fusion / padding / bf16 packing).
PARAM_ORDER = ['ln_e_g', 'ln_e_b',
               'wqkv', 'bqkv', 'wo_h', 'bo', 'ln1g', 'ln1b',
               'w1', 'b1', 'w2', 'b2', 'ln2g', 'ln2b',
               'pool_w', 'pool_b', 'cls_w_pad', 'cls_b_pad']


def init_params(seed=0):
    """PyTorch-layout parameters (f32), matching the original module."""
    key = jax.random.PRNGKey(seed)

    def take():
        nonlocal key
        key, sub = jax.random.split(key)
        return sub

    std = 0.02
    nrm = lambda shape: jax.random.normal(take(), shape, jnp.float32) * std
    stack = lambda shape: jnp.stack([nrm(shape) for _ in range(NUM_LAYERS)])

    p = {}
    p['tok_emb'] = nrm((VOCAB, HIDDEN))
    p['pos_emb'] = nrm((MAX_POS, HIDDEN))
    p['seg_emb'] = nrm((TYPE_VOCAB, HIDDEN))
    p['ln_e_g'] = jnp.ones((1, HIDDEN), jnp.float32)
    p['ln_e_b'] = jnp.zeros((1, HIDDEN), jnp.float32)
    p['wq'] = stack((HIDDEN, HIDDEN));        p['bq'] = stack((1, HIDDEN))
    p['wk'] = stack((HIDDEN, HIDDEN));        p['bk'] = stack((1, HIDDEN))
    p['wv'] = stack((HIDDEN, HIDDEN));        p['bv'] = stack((1, HIDDEN))
    p['wo'] = stack((HIDDEN, HIDDEN));        p['bo'] = stack((1, HIDDEN))
    p['ln1g'] = jnp.ones((NUM_LAYERS, 1, HIDDEN), jnp.float32)
    p['ln1b'] = jnp.zeros((NUM_LAYERS, 1, HIDDEN), jnp.float32)
    p['w1'] = stack((HIDDEN, INTERMEDIATE));  p['b1'] = stack((1, INTERMEDIATE))
    p['w2'] = stack((INTERMEDIATE, HIDDEN));  p['b2'] = stack((1, HIDDEN))
    p['ln2g'] = jnp.ones((NUM_LAYERS, 1, HIDDEN), jnp.float32)
    p['ln2b'] = jnp.zeros((NUM_LAYERS, 1, HIDDEN), jnp.float32)
    p['pool_w'] = nrm((HIDDEN, HIDDEN));      p['pool_b'] = nrm((1, HIDDEN))
    p['cls_w'] = nrm((HIDDEN, NUM_LABELS));   p['cls_b'] = nrm((1, NUM_LABELS))
    return p


def pack_params(p):
    """Repack PyTorch-layout params into the kernel's fused / padded / bf16 layout."""
    kp = {}
    kp['ln_e_g'] = p['ln_e_g']
    kp['ln_e_b'] = p['ln_e_b']
    # fused Q|K|V projection, zero-padded to 128 output lanes
    wqkv = jnp.concatenate([p['wq'], p['wk'], p['wv']], axis=-1)          # [L, H, 3H]
    bqkv = jnp.concatenate([p['bq'], p['bk'], p['bv']], axis=-1)          # [L, 1, 3H]
    kp['wqkv'] = jnp.pad(wqkv, ((0, 0), (0, 0), (0, QKV_PAD - 3 * HIDDEN))).astype(MXU_DTYPE)
    kp['bqkv'] = jnp.pad(bqkv, ((0, 0), (0, 0), (0, QKV_PAD - 3 * HIDDEN)))
    # output projection split per head so the head-concat folds into the matmul
    kp['wo_h'] = p['wo'].reshape(NUM_LAYERS, NUM_HEADS, HEAD_DIM, HIDDEN).astype(MXU_DTYPE)
    kp['bo'] = p['bo']
    kp['ln1g'] = p['ln1g']; kp['ln1b'] = p['ln1b']
    kp['w1'] = p['w1'].astype(MXU_DTYPE); kp['b1'] = p['b1']
    kp['w2'] = p['w2'].astype(MXU_DTYPE); kp['b2'] = p['b2']
    kp['ln2g'] = p['ln2g']; kp['ln2b'] = p['ln2b']
    kp['pool_w'] = p['pool_w'].astype(MXU_DTYPE); kp['pool_b'] = p['pool_b']
    # classifier zero-padded to a lane-dense 128-wide output
    kp['cls_w_pad'] = jnp.pad(p['cls_w'], ((0, 0), (0, CLS_PAD - NUM_LABELS))).astype(MXU_DTYPE)
    kp['cls_b_pad'] = jnp.pad(p['cls_b'], ((0, 0), (0, CLS_PAD - NUM_LABELS)))
    return kp


def bert_for_sentence_classification(input_ids, attention_mask, params):
    """input_ids: [src_len, batch] int32; attention_mask: [batch, src_len] bool (True = pad)."""
    S, B = input_ids.shape
    # embeddings (glue): token + position (arange) + segment (token_type_ids=None -> 0)
    tok = params['tok_emb'][input_ids]                    # [S, B, H]
    pos = params['pos_emb'][:S][:, None, :]               # [S, 1, H]
    seg = params['seg_emb'][0][None, None, :]             # [1, 1, H]
    emb = (tok + pos + seg).astype(jnp.float32)           # [S, B, H]
    emb_bsh = jnp.transpose(emb, (1, 0, 2))               # [B, S, H] for per-batch blocking
    # additive key-padding bias kept in f32 (-1e9 at padded keys), shaped [B, 1, S]
    mask_bias = jnp.where(attention_mask, jnp.float32(-1e9), jnp.float32(0.0))[:, None, :]

    kp = pack_params(params)
    weights = [kp[k] for k in PARAM_ORDER]
    args = [emb_bsh, mask_bias] + weights

    def _full_spec(shape):
        nd = len(shape)
        return pl.BlockSpec(shape, lambda b, nd=nd: (0,) * nd)   # weights resident across grid

    in_specs = [pl.BlockSpec((1, S, HIDDEN), lambda b: (b, 0, 0)),   # per-batch activations
                pl.BlockSpec((1, 1, S), lambda b: (b, 0, 0))]        # per-batch mask bias
    in_specs += [_full_spec(w.shape) for w in weights]

    # advisory cost estimate so XLA schedules the embedding gathers around the kernel
    per_layer_flops = (2 * S * HIDDEN * QKV_PAD                      # fused QKV
                       + 2 * 2 * NUM_HEADS * S * S * HEAD_DIM        # scores + ctx
                       + 2 * S * HIDDEN * HIDDEN                     # output projection
                       + 2 * 2 * S * HIDDEN * INTERMEDIATE)          # FFN up + down
    per_batch_flops = (NUM_LAYERS * per_layer_flops
                       + 2 * HIDDEN * HIDDEN + 2 * HIDDEN * CLS_PAD)  # pooler + classifier
    per_batch_trans = NUM_LAYERS * (NUM_HEADS * S * S + S * INTERMEDIATE) + HIDDEN
    bytes_accessed = sum(int(a.size) * a.dtype.itemsize for a in args) + B * CLS_PAD * 4
    cost = pl.CostEstimate(flops=int(B * per_batch_flops),
                           transcendentals=int(B * per_batch_trans),
                           bytes_accessed=int(bytes_accessed))

    logits_pad = pl.pallas_call(
        bert_cls_kernel,
        out_shape=jax.ShapeDtypeStruct((B, 1, CLS_PAD), jnp.float32),
        grid=(B,),
        in_specs=in_specs,
        out_specs=pl.BlockSpec((1, 1, CLS_PAD), lambda b: (b, 0, 0)),
        compiler_params=pltpu.CompilerParams(dimension_semantics=("parallel",)),
        cost_estimate=cost,
    )(*args)
    return logits_pad[:, 0, :NUM_LABELS]                  # [B, NUM_LABELS]


if __name__ == "__main__":
    key = jax.random.PRNGKey(0)
    k_ids, _ = jax.random.split(key)
    input_ids = jax.random.randint(k_ids, (SRC_LEN, BATCH), 0, VOCAB, dtype=jnp.int32)
    # padding mask: last two tokens of the second sentence are padding
    attention_mask = jnp.zeros((BATCH, SRC_LEN), dtype=bool).at[1, SRC_LEN - 2:].set(True)

    params = init_params(seed=0)
    logits = bert_for_sentence_classification(input_ids, attention_mask, params)
    logits = jax.block_until_ready(logits)
    assert logits.shape == (BATCH, NUM_LABELS)
    assert bool(jnp.all(jnp.isfinite(logits)))
    print("KERNEL_OK")
</pallas_src>

<mosaic_0001>
module attributes {stable_mosaic.version = 11 : i64} {
  func.func @bert_cls_kernel(%arg0: i32, %arg1: memref<1x8x32xf32, #tpu.memory_space<vmem>>, %arg2: memref<1x1x8xf32, #tpu.memory_space<vmem>>, %arg3: memref<1x32xf32, #tpu.memory_space<vmem>>, %arg4: memref<1x32xf32, #tpu.memory_space<vmem>>, %arg5: memref<2x32x128xbf16, #tpu.memory_space<vmem>>, %arg6: memref<2x1x128xf32, #tpu.memory_space<vmem>>, %arg7: memref<2x2x16x32xbf16, #tpu.memory_space<vmem>>, %arg8: memref<2x1x32xf32, #tpu.memory_space<vmem>>, %arg9: memref<2x1x32xf32, #tpu.memory_space<vmem>>, %arg10: memref<2x1x32xf32, #tpu.memory_space<vmem>>, %arg11: memref<2x32x64xbf16, #tpu.memory_space<vmem>>, %arg12: memref<2x1x64xf32, #tpu.memory_space<vmem>>, %arg13: memref<2x64x32xbf16, #tpu.memory_space<vmem>>, %arg14: memref<2x1x32xf32, #tpu.memory_space<vmem>>, %arg15: memref<2x1x32xf32, #tpu.memory_space<vmem>>, %arg16: memref<2x1x32xf32, #tpu.memory_space<vmem>>, %arg17: memref<32x32xbf16, #tpu.memory_space<vmem>>, %arg18: memref<1x32xf32, #tpu.memory_space<vmem>>, %arg19: memref<32x128xbf16, #tpu.memory_space<vmem>>, %arg20: memref<1x128xf32, #tpu.memory_space<vmem>>, %arg21: memref<1x1x128xf32, #tpu.memory_space<vmem>>) attributes {dimension_semantics = [#tpu.dimension_semantics<parallel>], iteration_bounds = array<i64: 2>, scalar_prefetch = 0 : i64, scratch_operands = 0 : i64, tpu.core_type = #tpu.core_type<tc>, window_params = [{transform_indices = @transform_0, window_bounds = array<i64: 1, 8, 32>}, {transform_indices = @transform_1, window_bounds = array<i64: 1, 1, 8>}, {pipeline_mode = #tpu.pipeline_mode<synchronous>, transform_indices = @transform_2, window_bounds = array<i64: 1, 32>}, {pipeline_mode = #tpu.pipeline_mode<synchronous>, transform_indices = @transform_3, window_bounds = array<i64: 1, 32>}, {pipeline_mode = #tpu.pipeline_mode<synchronous>, transform_indices = @transform_4, window_bounds = array<i64: 2, 32, 128>}, {pipeline_mode = #tpu.pipeline_mode<synchronous>, transform_indices = @transform_5, window_bounds = array<i64: 2, 1, 128>}, {pipeline_mode = #tpu.pipeline_mode<synchronous>, transform_indices = @transform_6, window_bounds = array<i64: 2, 2, 16, 32>}, {pipeline_mode = #tpu.pipeline_mode<synchronous>, transform_indices = @transform_7, window_bounds = array<i64: 2, 1, 32>}, {pipeline_mode = #tpu.pipeline_mode<synchronous>, transform_indices = @transform_8, window_bounds = array<i64: 2, 1, 32>}, {pipeline_mode = #tpu.pipeline_mode<synchronous>, transform_indices = @transform_9, window_bounds = array<i64: 2, 1, 32>}, {pipeline_mode = #tpu.pipeline_mode<synchronous>, transform_indices = @transform_10, window_bounds = array<i64: 2, 32, 64>}, {pipeline_mode = #tpu.pipeline_mode<synchronous>, transform_indices = @transform_11, window_bounds = array<i64: 2, 1, 64>}, {pipeline_mode = #tpu.pipeline_mode<synchronous>, transform_indices = @transform_12, window_bounds = array<i64: 2, 64, 32>}, {pipeline_mode = #tpu.pipeline_mode<synchronous>, transform_indices = @transform_13, window_bounds = array<i64: 2, 1, 32>}, {pipeline_mode = #tpu.pipeline_mode<synchronous>, transform_indices = @transform_14, window_bounds = array<i64: 2, 1, 32>}, {pipeline_mode = #tpu.pipeline_mode<synchronous>, transform_indices = @transform_15, window_bounds = array<i64: 2, 1, 32>}, {pipeline_mode = #tpu.pipeline_mode<synchronous>, transform_indices = @transform_16, window_bounds = array<i64: 32, 32>}, {pipeline_mode = #tpu.pipeline_mode<synchronous>, transform_indices = @transform_17, window_bounds = array<i64: 1, 32>}, {pipeline_mode = #tpu.pipeline_mode<synchronous>, transform_indices = @transform_18, window_bounds = array<i64: 32, 128>}, {pipeline_mode = #tpu.pipeline_mode<synchronous>, transform_indices = @transform_19, window_bounds = array<i64: 1, 128>}, {transform_indices = @transform_20, window_bounds = array<i64: 1, 1, 128>}]} {
    %c0 = arith.constant 0 : index
    %c0_0 = arith.constant 0 : index
    %c0_1 = arith.constant 0 : index
    %0 = vector.load %arg1[%c0, %c0_0, %c0_1] : memref<1x8x32xf32, #tpu.memory_space<vmem>>, vector<1x8x32xf32>
    %1 = vector.shape_cast %0 : vector<1x8x32xf32> to vector<8x32xf32>
    %c0_2 = arith.constant 0 : index
    %c0_3 = arith.constant 0 : index
    %2 = vector.load %arg3[%c0_2, %c0_3] : memref<1x32xf32, #tpu.memory_space<vmem>>, vector<1x32xf32>
    %c0_4 = arith.constant 0 : index
    %c0_5 = arith.constant 0 : index
    %3 = vector.load %arg4[%c0_4, %c0_5] : memref<1x32xf32, #tpu.memory_space<vmem>>, vector<1x32xf32>
    %cst = arith.constant dense<0.000000e+00> : vector<8xf32>
    %4 = vector.multi_reduction <add>, %1, %cst [1] : vector<8x32xf32> to vector<8xf32>
    %5 = vector.shape_cast %4 : vector<8xf32> to vector<8x1xf32>
    %cst_6 = arith.constant 3.200000e+01 : f32
    %6 = vector.broadcast %cst_6 : f32 to vector<8x1xf32>
    %7 = arith.divf %5, %6 : vector<8x1xf32>
    %8 = vector.broadcast %7 : vector<8x1xf32> to vector<8x32xf32>
    %9 = arith.subf %1, %8 : vector<8x32xf32>
    %10 = arith.mulf %9, %9 : vector<8x32xf32>
    %cst_7 = arith.constant dense<0.000000e+00> : vector<8xf32>
    %11 = vector.multi_reduction <add>, %10, %cst_7 [1] : vector<8x32xf32> to vector<8xf32>
    %12 = vector.shape_cast %11 : vector<8xf32> to vector<8x1xf32>
    %cst_8 = arith.constant 3.200000e+01 : f32
    %13 = vector.broadcast %cst_8 : f32 to vector<8x1xf32>
    %14 = arith.divf %12, %13 : vector<8x1xf32>
    %15 = vector.broadcast %7 : vector<8x1xf32> to vector<8x32xf32>
    %16 = arith.subf %1, %15 : vector<8x32xf32>
    %cst_9 = arith.constant 9.99999996E-13 : f32
    %17 = vector.broadcast %cst_9 : f32 to vector<8x1xf32>
    %18 = arith.addf %14, %17 : vector<8x1xf32>
    %19 = math.rsqrt %18 : vector<8x1xf32>
    %20 = vector.broadcast %19 : vector<8x1xf32> to vector<8x32xf32>
    %21 = arith.mulf %16, %20 : vector<8x32xf32>
    %22 = vector.broadcast %2 : vector<1x32xf32> to vector<8x32xf32>
    %23 = arith.mulf %21, %22 : vector<8x32xf32>
    %24 = vector.broadcast %3 : vector<1x32xf32> to vector<8x32xf32>
    %25 = arith.addf %23, %24 : vector<8x32xf32>
    %c0_10 = arith.constant 0 : index
    %c0_11 = arith.constant 0 : index
    %c0_12 = arith.constant 0 : index
    %26 = vector.load %arg2[%c0_10, %c0_11, %c0_12] : memref<1x1x8xf32, #tpu.memory_space<vmem>>, vector<1x1x8xf32>
    %27 = vector.shape_cast %26 : vector<1x1x8xf32> to vector<1x1x8xf32>
    %28 = vector.broadcast %27 : vector<1x1x8xf32> to vector<2x8x8xf32>
    %29 = arith.truncf %25 : vector<8x32xf32> to vector<8x32xbf16>
    %c0_13 = arith.constant 0 : index
    %c0_14 = arith.constant 0 : index
    %c0_15 = arith.constant 0 : index
    %30 = vector.load %arg5[%c0_13, %c0_14, %c0_15] : memref<2x32x128xbf16, #tpu.memory_space<vmem>>, vector<1x32x128xbf16>
    %31 = vector.shape_cast %30 : vector<1x32x128xbf16> to vector<32x128xbf16>
    %cst_16 = arith.constant dense<0.000000e+00> : vector<8x128xf32>
    %32 = tpu.matmul %29, %31, %cst_16 {dimension_numbers = #tpu.dot_dimension_numbers<[1], [0], [0], [1], [0, 0, 1, 1], [], []>} : vector<8x32xbf16>, vector<32x128xbf16>, vector<8x128xf32> -> vector<8x128xf32>
    %c0_17 = arith.constant 0 : index
    %c0_18 = arith.constant 0 : index
    %c0_19 = arith.constant 0 : index
    %33 = vector.load %arg6[%c0_17, %c0_18, %c0_19] : memref<2x1x128xf32, #tpu.memory_space<vmem>>, vector<1x1x128xf32>
    %34 = vector.shape_cast %33 : vector<1x1x128xf32> to vector<1x128xf32>
    %35 = vector.broadcast %34 : vector<1x128xf32> to vector<8x128xf32>
    %36 = arith.addf %32, %35 : vector<8x128xf32>
    %37 = vector.extract_strided_slice %36 {offsets = [0, 0], sizes = [8, 32], strides = [1, 1]} : vector<8x128xf32> to vector<8x32xf32>
    %cst_20 = arith.constant 2.500000e-01 : f32
    %38 = vector.broadcast %cst_20 : f32 to vector<8x32xf32>
    %39 = arith.mulf %37, %38 : vector<8x32xf32>
    %40 = vector.extract_strided_slice %36 {offsets = [0, 32], sizes = [8, 32], strides = [1, 1]} : vector<8x128xf32> to vector<8x32xf32>
    %41 = vector.extract_strided_slice %36 {offsets = [0, 64], sizes = [8, 32], strides = [1, 1]} : vector<8x128xf32> to vector<8x32xf32>
    %42 = vector.extract_strided_slice %39 {offsets = [0, 0], sizes = [8, 16], strides = [1, 1]} : vector<8x32xf32> to vector<8x16xf32>
    %43 = vector.extract_strided_slice %39 {offsets = [0, 16], sizes = [8, 16], strides = [1, 1]} : vector<8x32xf32> to vector<8x16xf32>
    %44 = vector.shape_cast %42 : vector<8x16xf32> to vector<1x8x16xf32>
    %45 = vector.shape_cast %43 : vector<8x16xf32> to vector<1x8x16xf32>
    %46 = tpu.concatenate %44, %45 in 0 : vector<1x8x16xf32>, vector<1x8x16xf32> -> vector<2x8x16xf32>
    %47 = vector.extract_strided_slice %40 {offsets = [0, 0], sizes = [8, 16], strides = [1, 1]} : vector<8x32xf32> to vector<8x16xf32>
    %48 = vector.extract_strided_slice %40 {offsets = [0, 16], sizes = [8, 16], strides = [1, 1]} : vector<8x32xf32> to vector<8x16xf32>
    %49 = vector.shape_cast %47 : vector<8x16xf32> to vector<1x8x16xf32>
    %50 = vector.shape_cast %48 : vector<8x16xf32> to vector<1x8x16xf32>
    %51 = tpu.concatenate %49, %50 in 0 : vector<1x8x16xf32>, vector<1x8x16xf32> -> vector<2x8x16xf32>
    %52 = vector.extract_strided_slice %41 {offsets = [0, 0], sizes = [8, 16], strides = [1, 1]} : vector<8x32xf32> to vector<8x16xf32>
    %53 = vector.extract_strided_slice %41 {offsets = [0, 16], sizes = [8, 16], strides = [1, 1]} : vector<8x32xf32> to vector<8x16xf32>
    %54 = vector.shape_cast %52 : vector<8x16xf32> to vector<1x8x16xf32>
    %55 = vector.shape_cast %53 : vector<8x16xf32> to vector<1x8x16xf32>
    %56 = tpu.concatenate %54, %55 in 0 : vector<1x8x16xf32>, vector<1x8x16xf32> -> vector<2x8x16xf32>
    %57 = arith.truncf %46 : vector<2x8x16xf32> to vector<2x8x16xbf16>
    %58 = arith.truncf %51 : vector<2x8x16xf32> to vector<2x8x16xbf16>
    "tpu.trace_start"() <{level = 10 : i32, message = "hqd,hkd->hqk"}> : () -> ()
    %cst_21 = arith.constant dense<0.000000e+00> : vector<2x8x8xf32>
    %59 = tpu.matmul %57, %58, %cst_21 {dimension_numbers = #tpu.dot_dimension_numbers<[2], [2], [1], [1], [0, 0, 0, 1, 1, 1], [0], [0]>} : vector<2x8x16xbf16>, vector<2x8x16xbf16>, vector<2x8x8xf32> -> vector<2x8x8xf32>
    "tpu.trace_stop"() : () -> ()
    %60 = arith.addf %59, %28 : vector<2x8x8xf32>
    %cst_22 = arith.constant dense<0xFF800000> : vector<2x8xf32>
    %61 = vector.multi_reduction <maximumf>, %60, %cst_22 [2] : vector<2x8x8xf32> to vector<2x8xf32>
    %62 = vector.shape_cast %61 : vector<2x8xf32> to vector<2x8x1xf32>
    %63 = vector.broadcast %62 : vector<2x8x1xf32> to vector<2x8x8xf32>
    %64 = arith.subf %60, %63 : vector<2x8x8xf32>
    %65 = math.exp %64 : vector<2x8x8xf32>
    %cst_23 = arith.constant dense<0.000000e+00> : vector<2x8xf32>
    %66 = vector.multi_reduction <add>, %65, %cst_23 [2] : vector<2x8x8xf32> to vector<2x8xf32>
    %67 = vector.shape_cast %66 : vector<2x8xf32> to vector<2x8x1xf32>
    %68 = tpu.reciprocal %67 {approx = true} : vector<2x8x1xf32> -> vector<2x8x1xf32>
    %69 = vector.broadcast %68 : vector<2x8x1xf32> to vector<2x8x8xf32>
    %70 = arith.mulf %65, %69 : vector<2x8x8xf32>
    %71 = arith.truncf %70 : vector<2x8x8xf32> to vector<2x8x8xbf16>
    %72 = arith.truncf %56 : vector<2x8x16xf32> to vector<2x8x16xbf16>
    "tpu.trace_start"() <{level = 10 : i32, message = "hqk,hkd->hqd"}> : () -> ()
    %cst_24 = arith.constant dense<0.000000e+00> : vector<2x8x16xf32>
    %73 = tpu.matmul %71, %72, %cst_24 {dimension_numbers = #tpu.dot_dimension_numbers<[2], [1], [1], [2], [0, 0, 0, 1, 1, 2], [0], [0]>} : vector<2x8x8xbf16>, vector<2x8x16xbf16>, vector<2x8x16xf32> -> vector<2x8x16xf32>
    %cst_25 = arith.constant 0.000000e+00 : f32
    "tpu.trace_stop"() : () -> ()
    %74 = vector.broadcast %cst_25 : f32 to vector<8x32xf32>
    %75 = vector.extract_strided_slice %73 {offsets = [0, 0, 0], sizes = [1, 8, 16], strides = [1, 1, 1]} : vector<2x8x16xf32> to vector<1x8x16xf32>
    %76 = vector.shape_cast %75 : vector<1x8x16xf32> to vector<8x16xf32>
    %77 = arith.truncf %76 : vector<8x16xf32> to vector<8x16xbf16>
    %c0_26 = arith.constant 0 : index
    %c0_27 = arith.constant 0 : index
    %c0_28 = arith.constant 0 : index
    %c0_29 = arith.constant 0 : index
    %78 = vector.load %arg7[%c0_26, %c0_27, %c0_28, %c0_29] : memref<2x2x16x32xbf16, #tpu.memory_space<vmem>>, vector<1x1x16x32xbf16>
    %79 = vector.shape_cast %78 : vector<1x1x16x32xbf16> to vector<16x32xbf16>
    %cst_30 = arith.constant dense<0.000000e+00> : vector<8x32xf32>
    %80 = tpu.matmul %77, %79, %cst_30 {dimension_numbers = #tpu.dot_dimension_numbers<[1], [0], [0], [1], [0, 0, 1, 1], [], []>} : vector<8x16xbf16>, vector<16x32xbf16>, vector<8x32xf32> -> vector<8x32xf32>
    %81 = arith.addf %74, %80 : vector<8x32xf32>
    %82 = vector.extract_strided_slice %73 {offsets = [1, 0, 0], sizes = [1, 8, 16], strides = [1, 1, 1]} : vector<2x8x16xf32> to vector<1x8x16xf32>
    %83 = vector.shape_cast %82 : vector<1x8x16xf32> to vector<8x16xf32>
    %84 = arith.truncf %83 : vector<8x16xf32> to vector<8x16xbf16>
    %c0_31 = arith.constant 0 : index
    %c1 = arith.constant 1 : index
    %c0_32 = arith.constant 0 : index
    %c0_33 = arith.constant 0 : index
    %85 = vector.load %arg7[%c0_31, %c1, %c0_32, %c0_33] : memref<2x2x16x32xbf16, #tpu.memory_space<vmem>>, vector<1x1x16x32xbf16>
    %86 = vector.shape_cast %85 : vector<1x1x16x32xbf16> to vector<16x32xbf16>
    %cst_34 = arith.constant dense<0.000000e+00> : vector<8x32xf32>
    %87 = tpu.matmul %84, %86, %cst_34 {dimension_numbers = #tpu.dot_dimension_numbers<[1], [0], [0], [1], [0, 0, 1, 1], [], []>} : vector<8x16xbf16>, vector<16x32xbf16>, vector<8x32xf32> -> vector<8x32xf32>
    %88 = arith.addf %81, %87 : vector<8x32xf32>
    %c0_35 = arith.constant 0 : index
    %c0_36 = arith.constant 0 : index
    %c0_37 = arith.constant 0 : index
    %89 = vector.load %arg8[%c0_35, %c0_36, %c0_37] : memref<2x1x32xf32, #tpu.memory_space<vmem>>, vector<1x1x32xf32>
    %90 = vector.shape_cast %89 : vector<1x1x32xf32> to vector<1x32xf32>
    %91 = vector.broadcast %90 : vector<1x32xf32> to vector<8x32xf32>
    %92 = arith.addf %88, %91 : vector<8x32xf32>
    %93 = arith.addf %25, %92 : vector<8x32xf32>
    %c0_38 = arith.constant 0 : index
    %c0_39 = arith.constant 0 : index
    %c0_40 = arith.constant 0 : index
    %94 = vector.load %arg9[%c0_38, %c0_39, %c0_40] : memref<2x1x32xf32, #tpu.memory_space<vmem>>, vector<1x1x32xf32>
    %95 = vector.shape_cast %94 : vector<1x1x32xf32> to vector<1x32xf32>
    %c0_41 = arith.constant 0 : index
    %c0_42 = arith.constant 0 : index
    %c0_43 = arith.constant 0 : index
    %96 = vector.load %arg10[%c0_41, %c0_42, %c0_43] : memref<2x1x32xf32, #tpu.memory_space<vmem>>, vector<1x1x32xf32>
    %97 = vector.shape_cast %96 : vector<1x1x32xf32> to vector<1x32xf32>
    %cst_44 = arith.constant dense<0.000000e+00> : vector<8xf32>
    %98 = vector.multi_reduction <add>, %93, %cst_44 [1] : vector<8x32xf32> to vector<8xf32>
    %99 = vector.shape_cast %98 : vector<8xf32> to vector<8x1xf32>
    %cst_45 = arith.constant 3.200000e+01 : f32
    %100 = vector.broadcast %cst_45 : f32 to vector<8x1xf32>
    %101 = arith.divf %99, %100 : vector<8x1xf32>
    %102 = vector.broadcast %101 : vector<8x1xf32> to vector<8x32xf32>
    %103 = arith.subf %93, %102 : vector<8x32xf32>
    %104 = arith.mulf %103, %103 : vector<8x32xf32>
    %cst_46 = arith.constant dense<0.000000e+00> : vector<8xf32>
    %105 = vector.multi_reduction <add>, %104, %cst_46 [1] : vector<8x32xf32> to vector<8xf32>
    %106 = vector.shape_cast %105 : vector<8xf32> to vector<8x1xf32>
    %cst_47 = arith.constant 3.200000e+01 : f32
    %107 = vector.broadcast %cst_47 : f32 to vector<8x1xf32>
    %108 = arith.divf %106, %107 : vector<8x1xf32>
    %109 = vector.broadcast %101 : vector<8x1xf32> to vector<8x32xf32>
    %110 = arith.subf %93, %109 : vector<8x32xf32>
    %cst_48 = arith.constant 9.99999996E-13 : f32
    %111 = vector.broadcast %cst_48 : f32 to vector<8x1xf32>
    %112 = arith.addf %108, %111 : vector<8x1xf32>
    %113 = math.rsqrt %112 : vector<8x1xf32>
    %114 = vector.broadcast %113 : vector<8x1xf32> to vector<8x32xf32>
    %115 = arith.mulf %110, %114 : vector<8x32xf32>
    %116 = vector.broadcast %95 : vector<1x32xf32> to vector<8x32xf32>
    %117 = arith.mulf %115, %116 : vector<8x32xf32>
    %118 = vector.broadcast %97 : vector<1x32xf32> to vector<8x32xf32>
    %119 = arith.addf %117, %118 : vector<8x32xf32>
    %120 = arith.truncf %119 : vector<8x32xf32> to vector<8x32xbf16>
    %c0_49 = arith.constant 0 : index
    %c0_50 = arith.constant 0 : index
    %c0_51 = arith.constant 0 : index
    %121 = vector.load %arg11[%c0_49, %c0_50, %c0_51] : memref<2x32x64xbf16, #tpu.memory_space<vmem>>, vector<1x32x64xbf16>
    %122 = vector.shape_cast %121 : vector<1x32x64xbf16> to vector<32x64xbf16>
    %cst_52 = arith.constant dense<0.000000e+00> : vector<8x64xf32>
    %123 = tpu.matmul %120, %122, %cst_52 {dimension_numbers = #tpu.dot_dimension_numbers<[1], [0], [0], [1], [0, 0, 1, 1], [], []>} : vector<8x32xbf16>, vector<32x64xbf16>, vector<8x64xf32> -> vector<8x64xf32>
    %c0_53 = arith.constant 0 : index
    %c0_54 = arith.constant 0 : index
    %c0_55 = arith.constant 0 : index
    %124 = vector.load %arg12[%c0_53, %c0_54, %c0_55] : memref<2x1x64xf32, #tpu.memory_space<vmem>>, vector<1x1x64xf32>
    %125 = vector.shape_cast %124 : vector<1x1x64xf32> to vector<1x64xf32>
    %126 = vector.broadcast %125 : vector<1x64xf32> to vector<8x64xf32>
    %127 = arith.addf %123, %126 : vector<8x64xf32>
    %cst_56 = arith.constant 5.000000e-01 : f32
    %128 = vector.broadcast %cst_56 : f32 to vector<8x64xf32>
    %129 = arith.mulf %128, %127 : vector<8x64xf32>
    %cst_57 = arith.constant 0.707106769 : f32
    %130 = vector.broadcast %cst_57 : f32 to vector<8x64xf32>
    %131 = arith.mulf %127, %130 : vector<8x64xf32>
    %132 = math.erf %131 : vector<8x64xf32>
    %cst_58 = arith.constant 1.000000e+00 : f32
    %133 = vector.broadcast %cst_58 : f32 to vector<8x64xf32>
    %134 = arith.addf %133, %132 : vector<8x64xf32>
    %135 = arith.mulf %129, %134 : vector<8x64xf32>
    %136 = arith.truncf %135 : vector<8x64xf32> to vector<8x64xbf16>
    %c0_59 = arith.constant 0 : index
    %c0_60 = arith.constant 0 : index
    %c0_61 = arith.constant 0 : index
    %137 = vector.load %arg13[%c0_59, %c0_60, %c0_61] : memref<2x64x32xbf16, #tpu.memory_space<vmem>>, vector<1x64x32xbf16>
    %138 = vector.shape_cast %137 : vector<1x64x32xbf16> to vector<64x32xbf16>
    %cst_62 = arith.constant dense<0.000000e+00> : vector<8x32xf32>
    %139 = tpu.matmul %136, %138, %cst_62 {dimension_numbers = #tpu.dot_dimension_numbers<[1], [0], [0], [1], [0, 0, 1, 1], [], []>} : vector<8x64xbf16>, vector<64x32xbf16>, vector<8x32xf32> -> vector<8x32xf32>
    %c0_63 = arith.constant 0 : index
    %c0_64 = arith.constant 0 : index
    %c0_65 = arith.constant 0 : index
    %140 = vector.load %arg14[%c0_63, %c0_64, %c0_65] : memref<2x1x32xf32, #tpu.memory_space<vmem>>, vector<1x1x32xf32>
    %141 = vector.shape_cast %140 : vector<1x1x32xf32> to vector<1x32xf32>
    %142 = vector.broadcast %141 : vector<1x32xf32> to vector<8x32xf32>
    %143 = arith.addf %139, %142 : vector<8x32xf32>
    %144 = arith.addf %119, %143 : vector<8x32xf32>
    %c0_66 = arith.constant 0 : index
    %c0_67 = arith.constant 0 : index
    %c0_68 = arith.constant 0 : index
    %145 = vector.load %arg15[%c0_66, %c0_67, %c0_68] : memref<2x1x32xf32, #tpu.memory_space<vmem>>, vector<1x1x32xf32>
    %146 = vector.shape_cast %145 : vector<1x1x32xf32> to vector<1x32xf32>
    %c0_69 = arith.constant 0 : index
    %c0_70 = arith.constant 0 : index
    %c0_71 = arith.constant 0 : index
    %147 = vector.load %arg16[%c0_69, %c0_70, %c0_71] : memref<2x1x32xf32, #tpu.memory_space<vmem>>, vector<1x1x32xf32>
    %148 = vector.shape_cast %147 : vector<1x1x32xf32> to vector<1x32xf32>
    %cst_72 = arith.constant dense<0.000000e+00> : vector<8xf32>
    %149 = vector.multi_reduction <add>, %144, %cst_72 [1] : vector<8x32xf32> to vector<8xf32>
    %150 = vector.shape_cast %149 : vector<8xf32> to vector<8x1xf32>
    %cst_73 = arith.constant 3.200000e+01 : f32
    %151 = vector.broadcast %cst_73 : f32 to vector<8x1xf32>
    %152 = arith.divf %150, %151 : vector<8x1xf32>
    %153 = vector.broadcast %152 : vector<8x1xf32> to vector<8x32xf32>
    %154 = arith.subf %144, %153 : vector<8x32xf32>
    %155 = arith.mulf %154, %154 : vector<8x32xf32>
    %cst_74 = arith.constant dense<0.000000e+00> : vector<8xf32>
    %156 = vector.multi_reduction <add>, %155, %cst_74 [1] : vector<8x32xf32> to vector<8xf32>
    %157 = vector.shape_cast %156 : vector<8xf32> to vector<8x1xf32>
    %cst_75 = arith.constant 3.200000e+01 : f32
    %158 = vector.broadcast %cst_75 : f32 to vector<8x1xf32>
    %159 = arith.divf %157, %158 : vector<8x1xf32>
    %160 = vector.broadcast %152 : vector<8x1xf32> to vector<8x32xf32>
    %161 = arith.subf %144, %160 : vector<8x32xf32>
    %cst_76 = arith.constant 9.99999996E-13 : f32
    %162 = vector.broadcast %cst_76 : f32 to vector<8x1xf32>
    %163 = arith.addf %159, %162 : vector<8x1xf32>
    %164 = math.rsqrt %163 : vector<8x1xf32>
    %165 = vector.broadcast %164 : vector<8x1xf32> to vector<8x32xf32>
    %166 = arith.mulf %161, %165 : vector<8x32xf32>
    %167 = vector.broadcast %146 : vector<1x32xf32> to vector<8x32xf32>
    %168 = arith.mulf %166, %167 : vector<8x32xf32>
    %169 = vector.broadcast %148 : vector<1x32xf32> to vector<8x32xf32>
    %170 = arith.addf %168, %169 : vector<8x32xf32>
    %171 = arith.truncf %170 : vector<8x32xf32> to vector<8x32xbf16>
    %c1_77 = arith.constant 1 : index
    %c0_78 = arith.constant 0 : index
    %c0_79 = arith.constant 0 : index
    %172 = vector.load %arg5[%c1_77, %c0_78, %c0_79] : memref<2x32x128xbf16, #tpu.memory_space<vmem>>, vector<1x32x128xbf16>
    %173 = vector.shape_cast %172 : vector<1x32x128xbf16> to vector<32x128xbf16>
    %cst_80 = arith.constant dense<0.000000e+00> : vector<8x128xf32>
    %174 = tpu.matmul %171, %173, %cst_80 {dimension_numbers = #tpu.dot_dimension_numbers<[1], [0], [0], [1], [0, 0, 1, 1], [], []>} : vector<8x32xbf16>, vector<32x128xbf16>, vector<8x128xf32> -> vector<8x128xf32>
    %c1_81 = arith.constant 1 : index
    %c0_82 = arith.constant 0 : index
    %c0_83 = arith.constant 0 : index
    %175 = vector.load %arg6[%c1_81, %c0_82, %c0_83] : memref<2x1x128xf32, #tpu.memory_space<vmem>>, vector<1x1x128xf32>
    %176 = vector.shape_cast %175 : vector<1x1x128xf32> to vector<1x128xf32>
    %177 = vector.broadcast %176 : vector<1x128xf32> to vector<8x128xf32>
    %178 = arith.addf %174, %177 : vector<8x128xf32>
    %179 = vector.extract_strided_slice %178 {offsets = [0, 0], sizes = [8, 32], strides = [1, 1]} : vector<8x128xf32> to vector<8x32xf32>
    %cst_84 = arith.constant 2.500000e-01 : f32
    %180 = vector.broadcast %cst_84 : f32 to vector<8x32xf32>
    %181 = arith.mulf %179, %180 : vector<8x32xf32>
    %182 = vector.extract_strided_slice %178 {offsets = [0, 32], sizes = [8, 32], strides = [1, 1]} : vector<8x128xf32> to vector<8x32xf32>
    %183 = vector.extract_strided_slice %178 {offsets = [0, 64], sizes = [8, 32], strides = [1, 1]} : vector<8x128xf32> to vector<8x32xf32>
    %184 = vector.extract_strided_slice %181 {offsets = [0, 0], sizes = [8, 16], strides = [1, 1]} : vector<8x32xf32> to vector<8x16xf32>
    %185 = vector.extract_strided_slice %181 {offsets = [0, 16], sizes = [8, 16], strides = [1, 1]} : vector<8x32xf32> to vector<8x16xf32>
    %186 = vector.shape_cast %184 : vector<8x16xf32> to vector<1x8x16xf32>
    %187 = vector.shape_cast %185 : vector<8x16xf32> to vector<1x8x16xf32>
    %188 = tpu.concatenate %186, %187 in 0 : vector<1x8x16xf32>, vector<1x8x16xf32> -> vector<2x8x16xf32>
    %189 = vector.extract_strided_slice %182 {offsets = [0, 0], sizes = [8, 16], strides = [1, 1]} : vector<8x32xf32> to vector<8x16xf32>
    %190 = vector.extract_strided_slice %182 {offsets = [0, 16], sizes = [8, 16], strides = [1, 1]} : vector<8x32xf32> to vector<8x16xf32>
    %191 = vector.shape_cast %189 : vector<8x16xf32> to vector<1x8x16xf32>
    %192 = vector.shape_cast %190 : vector<8x16xf32> to vector<1x8x16xf32>
    %193 = tpu.concatenate %191, %192 in 0 : vector<1x8x16xf32>, vector<1x8x16xf32> -> vector<2x8x16xf32>
    %194 = vector.extract_strided_slice %183 {offsets = [0, 0], sizes = [8, 16], strides = [1, 1]} : vector<8x32xf32> to vector<8x16xf32>
    %195 = vector.extract_strided_slice %183 {offsets = [0, 16], sizes = [8, 16], strides = [1, 1]} : vector<8x32xf32> to vector<8x16xf32>
    %196 = vector.shape_cast %194 : vector<8x16xf32> to vector<1x8x16xf32>
    %197 = vector.shape_cast %195 : vector<8x16xf32> to vector<1x8x16xf32>
    %198 = tpu.concatenate %196, %197 in 0 : vector<1x8x16xf32>, vector<1x8x16xf32> -> vector<2x8x16xf32>
    %199 = arith.truncf %188 : vector<2x8x16xf32> to vector<2x8x16xbf16>
    %200 = arith.truncf %193 : vector<2x8x16xf32> to vector<2x8x16xbf16>
    "tpu.trace_start"() <{level = 10 : i32, message = "hqd,hkd->hqk"}> : () -> ()
    %cst_85 = arith.constant dense<0.000000e+00> : vector<2x8x8xf32>
    %201 = tpu.matmul %199, %200, %cst_85 {dimension_numbers = #tpu.dot_dimension_numbers<[2], [2], [1], [1], [0, 0, 0, 1, 1, 1], [0], [0]>} : vector<2x8x16xbf16>, vector<2x8x16xbf16>, vector<2x8x8xf32> -> vector<2x8x8xf32>
    "tpu.trace_stop"() : () -> ()
    %202 = arith.addf %201, %28 : vector<2x8x8xf32>
    %cst_86 = arith.constant dense<0xFF800000> : vector<2x8xf32>
    %203 = vector.multi_reduction <maximumf>, %202, %cst_86 [2] : vector<2x8x8xf32> to vector<2x8xf32>
    %204 = vector.shape_cast %203 : vector<2x8xf32> to vector<2x8x1xf32>
    %205 = vector.broadcast %204 : vector<2x8x1xf32> to vector<2x8x8xf32>
    %206 = arith.subf %202, %205 : vector<2x8x8xf32>
    %207 = math.exp %206 : vector<2x8x8xf32>
    %cst_87 = arith.constant dense<0.000000e+00> : vector<2x8xf32>
    %208 = vector.multi_reduction <add>, %207, %cst_87 [2] : vector<2x8x8xf32> to vector<2x8xf32>
    %209 = vector.shape_cast %208 : vector<2x8xf32> to vector<2x8x1xf32>
    %210 = tpu.reciprocal %209 {approx = true} : vector<2x8x1xf32> -> vector<2x8x1xf32>
    %211 = vector.broadcast %210 : vector<2x8x1xf32> to vector<2x8x8xf32>
    %212 = arith.mulf %207, %211 : vector<2x8x8xf32>
    %213 = arith.truncf %212 : vector<2x8x8xf32> to vector<2x8x8xbf16>
    %214 = arith.truncf %198 : vector<2x8x16xf32> to vector<2x8x16xbf16>
    "tpu.trace_start"() <{level = 10 : i32, message = "hqk,hkd->hqd"}> : () -> ()
    %cst_88 = arith.constant dense<0.000000e+00> : vector<2x8x16xf32>
    %215 = tpu.matmul %213, %214, %cst_88 {dimension_numbers = #tpu.dot_dimension_numbers<[2], [1], [1], [2], [0, 0, 0, 1, 1, 2], [0], [0]>} : vector<2x8x8xbf16>, vector<2x8x16xbf16>, vector<2x8x16xf32> -> vector<2x8x16xf32>
    %cst_89 = arith.constant 0.000000e+00 : f32
    "tpu.trace_stop"() : () -> ()
    %216 = vector.broadcast %cst_89 : f32 to vector<8x32xf32>
    %217 = vector.extract_strided_slice %215 {offsets = [0, 0, 0], sizes = [1, 8, 16], strides = [1, 1, 1]} : vector<2x8x16xf32> to vector<1x8x16xf32>
    %218 = vector.shape_cast %217 : vector<1x8x16xf32> to vector<8x16xf32>
    %219 = arith.truncf %218 : vector<8x16xf32> to vector<8x16xbf16>
    %c1_90 = arith.constant 1 : index
    %c0_91 = arith.constant 0 : index
    %c0_92 = arith.constant 0 : index
    %c0_93 = arith.constant 0 : index
    %220 = vector.load %arg7[%c1_90, %c0_91, %c0_92, %c0_93] : memref<2x2x16x32xbf16, #tpu.memory_space<vmem>>, vector<1x1x16x32xbf16>
    %221 = vector.shape_cast %220 : vector<1x1x16x32xbf16> to vector<16x32xbf16>
    %cst_94 = arith.constant dense<0.000000e+00> : vector<8x32xf32>
    %222 = tpu.matmul %219, %221, %cst_94 {dimension_numbers = #tpu.dot_dimension_numbers<[1], [0], [0], [1], [0, 0, 1, 1], [], []>} : vector<8x16xbf16>, vector<16x32xbf16>, vector<8x32xf32> -> vector<8x32xf32>
    %223 = arith.addf %216, %222 : vector<8x32xf32>
    %224 = vector.extract_strided_slice %215 {offsets = [1, 0, 0], sizes = [1, 8, 16], strides = [1, 1, 1]} : vector<2x8x16xf32> to vector<1x8x16xf32>
    %225 = vector.shape_cast %224 : vector<1x8x16xf32> to vector<8x16xf32>
    %226 = arith.truncf %225 : vector<8x16xf32> to vector<8x16xbf16>
    %c1_95 = arith.constant 1 : index
    %c1_96 = arith.constant 1 : index
    %c0_97 = arith.constant 0 : index
    %c0_98 = arith.constant 0 : index
    %227 = vector.load %arg7[%c1_95, %c1_96, %c0_97, %c0_98] : memref<2x2x16x32xbf16, #tpu.memory_space<vmem>>, vector<1x1x16x32xbf16>
    %228 = vector.shape_cast %227 : vector<1x1x16x32xbf16> to vector<16x32xbf16>
    %cst_99 = arith.constant dense<0.000000e+00> : vector<8x32xf32>
    %229 = tpu.matmul %226, %228, %cst_99 {dimension_numbers = #tpu.dot_dimension_numbers<[1], [0], [0], [1], [0, 0, 1, 1], [], []>} : vector<8x16xbf16>, vector<16x32xbf16>, vector<8x32xf32> -> vector<8x32xf32>
    %230 = arith.addf %223, %229 : vector<8x32xf32>
    %c1_100 = arith.constant 1 : index
    %c0_101 = arith.constant 0 : index
    %c0_102 = arith.constant 0 : index
    %231 = vector.load %arg8[%c1_100, %c0_101, %c0_102] : memref<2x1x32xf32, #tpu.memory_space<vmem>>, vector<1x1x32xf32>
    %232 = vector.shape_cast %231 : vector<1x1x32xf32> to vector<1x32xf32>
    %233 = vector.broadcast %232 : vector<1x32xf32> to vector<8x32xf32>
    %234 = arith.addf %230, %233 : vector<8x32xf32>
    %235 = arith.addf %170, %234 : vector<8x32xf32>
    %c1_103 = arith.constant 1 : index
    %c0_104 = arith.constant 0 : index
    %c0_105 = arith.constant 0 : index
    %236 = vector.load %arg9[%c1_103, %c0_104, %c0_105] : memref<2x1x32xf32, #tpu.memory_space<vmem>>, vector<1x1x32xf32>
    %237 = vector.shape_cast %236 : vector<1x1x32xf32> to vector<1x32xf32>
    %c1_106 = arith.constant 1 : index
    %c0_107 = arith.constant 0 : index
    %c0_108 = arith.constant 0 : index
    %238 = vector.load %arg10[%c1_106, %c0_107, %c0_108] : memref<2x1x32xf32, #tpu.memory_space<vmem>>, vector<1x1x32xf32>
    %239 = vector.shape_cast %238 : vector<1x1x32xf32> to vector<1x32xf32>
    %cst_109 = arith.constant dense<0.000000e+00> : vector<8xf32>
    %240 = vector.multi_reduction <add>, %235, %cst_109 [1] : vector<8x32xf32> to vector<8xf32>
    %241 = vector.shape_cast %240 : vector<8xf32> to vector<8x1xf32>
    %cst_110 = arith.constant 3.200000e+01 : f32
    %242 = vector.broadcast %cst_110 : f32 to vector<8x1xf32>
    %243 = arith.divf %241, %242 : vector<8x1xf32>
    %244 = vector.broadcast %243 : vector<8x1xf32> to vector<8x32xf32>
    %245 = arith.subf %235, %244 : vector<8x32xf32>
    %246 = arith.mulf %245, %245 : vector<8x32xf32>
    %cst_111 = arith.constant dense<0.000000e+00> : vector<8xf32>
    %247 = vector.multi_reduction <add>, %246, %cst_111 [1] : vector<8x32xf32> to vector<8xf32>
    %248 = vector.shape_cast %247 : vector<8xf32> to vector<8x1xf32>
    %cst_112 = arith.constant 3.200000e+01 : f32
    %249 = vector.broadcast %cst_112 : f32 to vector<8x1xf32>
    %250 = arith.divf %248, %249 : vector<8x1xf32>
    %251 = vector.broadcast %243 : vector<8x1xf32> to vector<8x32xf32>
    %252 = arith.subf %235, %251 : vector<8x32xf32>
    %cst_113 = arith.constant 9.99999996E-13 : f32
    %253 = vector.broadcast %cst_113 : f32 to vector<8x1xf32>
    %254 = arith.addf %250, %253 : vector<8x1xf32>
    %255 = math.rsqrt %254 : vector<8x1xf32>
    %256 = vector.broadcast %255 : vector<8x1xf32> to vector<8x32xf32>
    %257 = arith.mulf %252, %256 : vector<8x32xf32>
    %258 = vector.broadcast %237 : vector<1x32xf32> to vector<8x32xf32>
    %259 = arith.mulf %257, %258 : vector<8x32xf32>
    %260 = vector.broadcast %239 : vector<1x32xf32> to vector<8x32xf32>
    %261 = arith.addf %259, %260 : vector<8x32xf32>
    %262 = arith.truncf %261 : vector<8x32xf32> to vector<8x32xbf16>
    %c1_114 = arith.constant 1 : index
    %c0_115 = arith.constant 0 : index
    %c0_116 = arith.constant 0 : index
    %263 = vector.load %arg11[%c1_114, %c0_115, %c0_116] : memref<2x32x64xbf16, #tpu.memory_space<vmem>>, vector<1x32x64xbf16>
    %264 = vector.shape_cast %263 : vector<1x32x64xbf16> to vector<32x64xbf16>
    %cst_117 = arith.constant dense<0.000000e+00> : vector<8x64xf32>
    %265 = tpu.matmul %262, %264, %cst_117 {dimension_numbers = #tpu.dot_dimension_numbers<[1], [0], [0], [1], [0, 0, 1, 1], [], []>} : vector<8x32xbf16>, vector<32x64xbf16>, vector<8x64xf32> -> vector<8x64xf32>
    %c1_118 = arith.constant 1 : index
    %c0_119 = arith.constant 0 : index
    %c0_120 = arith.constant 0 : index
    %266 = vector.load %arg12[%c1_118, %c0_119, %c0_120] : memref<2x1x64xf32, #tpu.memory_space<vmem>>, vector<1x1x64xf32>
    %267 = vector.shape_cast %266 : vector<1x1x64xf32> to vector<1x64xf32>
    %268 = vector.broadcast %267 : vector<1x64xf32> to vector<8x64xf32>
    %269 = arith.addf %265, %268 : vector<8x64xf32>
    %cst_121 = arith.constant 5.000000e-01 : f32
    %270 = vector.broadcast %cst_121 : f32 to vector<8x64xf32>
    %271 = arith.mulf %270, %269 : vector<8x64xf32>
    %cst_122 = arith.constant 0.707106769 : f32
    %272 = vector.broadcast %cst_122 : f32 to vector<8x64xf32>
    %273 = arith.mulf %269, %272 : vector<8x64xf32>
    %274 = math.erf %273 : vector<8x64xf32>
    %cst_123 = arith.constant 1.000000e+00 : f32
    %275 = vector.broadcast %cst_123 : f32 to vector<8x64xf32>
    %276 = arith.addf %275, %274 : vector<8x64xf32>
    %277 = arith.mulf %271, %276 : vector<8x64xf32>
    %278 = arith.truncf %277 : vector<8x64xf32> to vector<8x64xbf16>
    %c1_124 = arith.constant 1 : index
    %c0_125 = arith.constant 0 : index
    %c0_126 = arith.constant 0 : index
    %279 = vector.load %arg13[%c1_124, %c0_125, %c0_126] : memref<2x64x32xbf16, #tpu.memory_space<vmem>>, vector<1x64x32xbf16>
    %280 = vector.shape_cast %279 : vector<1x64x32xbf16> to vector<64x32xbf16>
    %cst_127 = arith.constant dense<0.000000e+00> : vector<8x32xf32>
    %281 = tpu.matmul %278, %280, %cst_127 {dimension_numbers = #tpu.dot_dimension_numbers<[1], [0], [0], [1], [0, 0, 1, 1], [], []>} : vector<8x64xbf16>, vector<64x32xbf16>, vector<8x32xf32> -> vector<8x32xf32>
    %c1_128 = arith.constant 1 : index
    %c0_129 = arith.constant 0 : index
    %c0_130 = arith.constant 0 : index
    %282 = vector.load %arg14[%c1_128, %c0_129, %c0_130] : memref<2x1x32xf32, #tpu.memory_space<vmem>>, vector<1x1x32xf32>
    %283 = vector.shape_cast %282 : vector<1x1x32xf32> to vector<1x32xf32>
    %284 = vector.broadcast %283 : vector<1x32xf32> to vector<8x32xf32>
    %285 = arith.addf %281, %284 : vector<8x32xf32>
    %286 = arith.addf %261, %285 : vector<8x32xf32>
    %c1_131 = arith.constant 1 : index
    %c0_132 = arith.constant 0 : index
    %c0_133 = arith.constant 0 : index
    %287 = vector.load %arg15[%c1_131, %c0_132, %c0_133] : memref<2x1x32xf32, #tpu.memory_space<vmem>>, vector<1x1x32xf32>
    %288 = vector.shape_cast %287 : vector<1x1x32xf32> to vector<1x32xf32>
    %c1_134 = arith.constant 1 : index
    %c0_135 = arith.constant 0 : index
    %c0_136 = arith.constant 0 : index
    %289 = vector.load %arg16[%c1_134, %c0_135, %c0_136] : memref<2x1x32xf32, #tpu.memory_space<vmem>>, vector<1x1x32xf32>
    %290 = vector.shape_cast %289 : vector<1x1x32xf32> to vector<1x32xf32>
    %cst_137 = arith.constant dense<0.000000e+00> : vector<8xf32>
    %291 = vector.multi_reduction <add>, %286, %cst_137 [1] : vector<8x32xf32> to vector<8xf32>
    %292 = vector.shape_cast %291 : vector<8xf32> to vector<8x1xf32>
    %cst_138 = arith.constant 3.200000e+01 : f32
    %293 = vector.broadcast %cst_138 : f32 to vector<8x1xf32>
    %294 = arith.divf %292, %293 : vector<8x1xf32>
    %295 = vector.broadcast %294 : vector<8x1xf32> to vector<8x32xf32>
    %296 = arith.subf %286, %295 : vector<8x32xf32>
    %297 = arith.mulf %296, %296 : vector<8x32xf32>
    %cst_139 = arith.constant dense<0.000000e+00> : vector<8xf32>
    %298 = vector.multi_reduction <add>, %297, %cst_139 [1] : vector<8x32xf32> to vector<8xf32>
    %299 = vector.shape_cast %298 : vector<8xf32> to vector<8x1xf32>
    %cst_140 = arith.constant 3.200000e+01 : f32
    %300 = vector.broadcast %cst_140 : f32 to vector<8x1xf32>
    %301 = arith.divf %299, %300 : vector<8x1xf32>
    %302 = vector.broadcast %294 : vector<8x1xf32> to vector<8x32xf32>
    %303 = arith.subf %286, %302 : vector<8x32xf32>
    %cst_141 = arith.constant 9.99999996E-13 : f32
    %304 = vector.broadcast %cst_141 : f32 to vector<8x1xf32>
    %305 = arith.addf %301, %304 : vector<8x1xf32>
    %306 = math.rsqrt %305 : vector<8x1xf32>
    %307 = vector.broadcast %306 : vector<8x1xf32> to vector<8x32xf32>
    %308 = arith.mulf %303, %307 : vector<8x32xf32>
    %309 = vector.broadcast %288 : vector<1x32xf32> to vector<8x32xf32>
    %310 = arith.mulf %308, %309 : vector<8x32xf32>
    %311 = vector.broadcast %290 : vector<1x32xf32> to vector<8x32xf32>
    %312 = arith.addf %310, %311 : vector<8x32xf32>
    %313 = vector.extract_strided_slice %312 {offsets = [0, 0], sizes = [1, 32], strides = [1, 1]} : vector<8x32xf32> to vector<1x32xf32>
    %314 = arith.truncf %313 : vector<1x32xf32> to vector<1x32xbf16>
    %c0_142 = arith.constant 0 : index
    %c0_143 = arith.constant 0 : index
    %315 = vector.load %arg17[%c0_142, %c0_143] : memref<32x32xbf16, #tpu.memory_space<vmem>>, vector<32x32xbf16>
    %cst_144 = arith.constant dense<0.000000e+00> : vector<1x32xf32>
    %316 = tpu.matmul %314, %315, %cst_144 {dimension_numbers = #tpu.dot_dimension_numbers<[1], [0], [0], [1], [0, 0, 1, 1], [], []>} : vector<1x32xbf16>, vector<32x32xbf16>, vector<1x32xf32> -> vector<1x32xf32>
    %c0_145 = arith.constant 0 : index
    %c0_146 = arith.constant 0 : index
    %317 = vector.load %arg18[%c0_145, %c0_146] : memref<1x32xf32, #tpu.memory_space<vmem>>, vector<1x32xf32>
    %318 = arith.addf %316, %317 : vector<1x32xf32>
    %319 = math.tanh %318 : vector<1x32xf32>
    %320 = arith.truncf %319 : vector<1x32xf32> to vector<1x32xbf16>
    %c0_147 = arith.constant 0 : index
    %c0_148 = arith.constant 0 : index
    %321 = vector.load %arg19[%c0_147, %c0_148] : memref<32x128xbf16, #tpu.memory_space<vmem>>, vector<32x128xbf16>
    %cst_149 = arith.constant dense<0.000000e+00> : vector<1x128xf32>
    %322 = tpu.matmul %320, %321, %cst_149 {dimension_numbers = #tpu.dot_dimension_numbers<[1], [0], [0], [1], [0, 0, 1, 1], [], []>} : vector<1x32xbf16>, vector<32x128xbf16>, vector<1x128xf32> -> vector<1x128xf32>
    %c0_150 = arith.constant 0 : index
    %c0_151 = arith.constant 0 : index
    %323 = vector.load %arg20[%c0_150, %c0_151] : memref<1x128xf32, #tpu.memory_space<vmem>>, vector<1x128xf32>
    %324 = arith.addf %322, %323 : vector<1x128xf32>
    %325 = vector.shape_cast %324 : vector<1x128xf32> to vector<1x1x128xf32>
    %c0_152 = arith.constant 0 : index
    %c0_153 = arith.constant 0 : index
    %c0_154 = arith.constant 0 : index
    %326 = vector.load %arg21[%c0_152, %c0_153, %c0_154] : memref<1x1x128xf32, #tpu.memory_space<vmem>>, vector<1x1x128xf32>
    tpu.vector_store %arg21[%c0_152, %c0_153, %c0_154], %325 {strides = array<i32>} : memref<1x1x128xf32, #tpu.memory_space<vmem>>, vector<1x1x128xf32>,
    return
  }
  func.func @transform_0(%arg0: i32) -> (i32, i32, i32) {
    %c0_i32 = arith.constant 0 : i32
    %c0_i32_0 = arith.constant 0 : i32
    %c0_i32_1 = arith.constant 0 : i32
    return %arg0, %c0_i32, %c0_i32_0 : i32, i32, i32
  }
  func.func @transform_1(%arg0: i32) -> (i32, i32, i32) {
    %c0_i32 = arith.constant 0 : i32
    %c0_i32_0 = arith.constant 0 : i32
    %c0_i32_1 = arith.constant 0 : i32
    return %arg0, %c0_i32, %c0_i32_0 : i32, i32, i32
  }
  func.func @transform_2(%arg0: i32) -> (i32, i32) {
    %c0_i32 = arith.constant 0 : i32
    %c0_i32_0 = arith.constant 0 : i32
    %c0_i32_1 = arith.constant 0 : i32
    return %c0_i32, %c0_i32_0 : i32, i32
  }
  func.func @transform_3(%arg0: i32) -> (i32, i32) {
    %c0_i32 = arith.constant 0 : i32
    %c0_i32_0 = arith.constant 0 : i32
    %c0_i32_1 = arith.constant 0 : i32
    return %c0_i32, %c0_i32_0 : i32, i32
  }
  func.func @transform_4(%arg0: i32) -> (i32, i32, i32) {
    %c0_i32 = arith.constant 0 : i32
    %c0_i32_0 = arith.constant 0 : i32
    %c0_i32_1 = arith.constant 0 : i32
    %c0_i32_2 = arith.constant 0 : i32
    return %c0_i32, %c0_i32_0, %c0_i32_1 : i32, i32, i32
  }
  func.func @transform_5(%arg0: i32) -> (i32, i32, i32) {
    %c0_i32 = arith.constant 0 : i32
    %c0_i32_0 = arith.constant 0 : i32
    %c0_i32_1 = arith.constant 0 : i32
    %c0_i32_2 = arith.constant 0 : i32
    return %c0_i32, %c0_i32_0, %c0_i32_1 : i32, i32, i32
  }
  func.func @transform_6(%arg0: i32) -> (i32, i32, i32, i32) {
    %c0_i32 = arith.constant 0 : i32
    %c0_i32_0 = arith.constant 0 : i32
    %c0_i32_1 = arith.constant 0 : i32
    %c0_i32_2 = arith.constant 0 : i32
    %c0_i32_3 = arith.constant 0 : i32
    return %c0_i32, %c0_i32_0, %c0_i32_1, %c0_i32_2 : i32, i32, i32, i32
  }
  func.func @transform_7(%arg0: i32) -> (i32, i32, i32) {
    %c0_i32 = arith.constant 0 : i32
    %c0_i32_0 = arith.constant 0 : i32
    %c0_i32_1 = arith.constant 0 : i32
    %c0_i32_2 = arith.constant 0 : i32
    return %c0_i32, %c0_i32_0, %c0_i32_1 : i32, i32, i32
  }
  func.func @transform_8(%arg0: i32) -> (i32, i32, i32) {
    %c0_i32 = arith.constant 0 : i32
    %c0_i32_0 = arith.constant 0 : i32
    %c0_i32_1 = arith.constant 0 : i32
    %c0_i32_2 = arith.constant 0 : i32
    return %c0_i32, %c0_i32_0, %c0_i32_1 : i32, i32, i32
  }
  func.func @transform_9(%arg0: i32) -> (i32, i32, i32) {
    %c0_i32 = arith.constant 0 : i32
    %c0_i32_0 = arith.constant 0 : i32
    %c0_i32_1 = arith.constant 0 : i32
    %c0_i32_2 = arith.constant 0 : i32
    return %c0_i32, %c0_i32_0, %c0_i32_1 : i32, i32, i32
  }
  func.func @transform_10(%arg0: i32) -> (i32, i32, i32) {
    %c0_i32 = arith.constant 0 : i32
    %c0_i32_0 = arith.constant 0 : i32
    %c0_i32_1 = arith.constant 0 : i32
    %c0_i32_2 = arith.constant 0 : i32
    return %c0_i32, %c0_i32_0, %c0_i32_1 : i32, i32, i32
  }
  func.func @transform_11(%arg0: i32) -> (i32, i32, i32) {
    %c0_i32 = arith.constant 0 : i32
    %c0_i32_0 = arith.constant 0 : i32
    %c0_i32_1 = arith.constant 0 : i32
    %c0_i32_2 = arith.constant 0 : i32
    return %c0_i32, %c0_i32_0, %c0_i32_1 : i32, i32, i32
  }
  func.func @transform_12(%arg0: i32) -> (i32, i32, i32) {
    %c0_i32 = arith.constant 0 : i32
    %c0_i32_0 = arith.constant 0 : i32
    %c0_i32_1 = arith.constant 0 : i32
    %c0_i32_2 = arith.constant 0 : i32
    return %c0_i32, %c0_i32_0, %c0_i32_1 : i32, i32, i32
  }
  func.func @transform_13(%arg0: i32) -> (i32, i32, i32) {
    %c0_i32 = arith.constant 0 : i32
    %c0_i32_0 = arith.constant 0 : i32
    %c0_i32_1 = arith.constant 0 : i32
    %c0_i32_2 = arith.constant 0 : i32
    return %c0_i32, %c0_i32_0, %c0_i32_1 : i32, i32, i32
  }
  func.func @transform_14(%arg0: i32) -> (i32, i32, i32) {
    %c0_i32 = arith.constant 0 : i32
    %c0_i32_0 = arith.constant 0 : i32
    %c0_i32_1 = arith.constant 0 : i32
    %c0_i32_2 = arith.constant 0 : i32
    return %c0_i32, %c0_i32_0, %c0_i32_1 : i32, i32, i32
  }
  func.func @transform_15(%arg0: i32) -> (i32, i32, i32) {
    %c0_i32 = arith.constant 0 : i32
    %c0_i32_0 = arith.constant 0 : i32
    %c0_i32_1 = arith.constant 0 : i32
    %c0_i32_2 = arith.constant 0 : i32
    return %c0_i32, %c0_i32_0, %c0_i32_1 : i32, i32, i32
  }
  func.func @transform_16(%arg0: i32) -> (i32, i32) {
    %c0_i32 = arith.constant 0 : i32
    %c0_i32_0 = arith.constant 0 : i32
    %c0_i32_1 = arith.constant 0 : i32
    return %c0_i32, %c0_i32_0 : i32, i32
  }
  func.func @transform_17(%arg0: i32) -> (i32, i32) {
    %c0_i32 = arith.constant 0 : i32
    %c0_i32_0 = arith.constant 0 : i32
    %c0_i32_1 = arith.constant 0 : i32
    return %c0_i32, %c0_i32_0 : i32, i32
  }
  func.func @transform_18(%arg0: i32) -> (i32, i32) {
    %c0_i32 = arith.constant 0 : i32
    %c0_i32_0 = arith.constant 0 : i32
    %c0_i32_1 = arith.constant 0 : i32
    return %c0_i32, %c0_i32_0 : i32, i32
  }
  func.func @transform_19(%arg0: i32) -> (i32, i32) {
    %c0_i32 = arith.constant 0 : i32
    %c0_i32_0 = arith.constant 0 : i32
    %c0_i32_1 = arith.constant 0 : i32
    return %c0_i32, %c0_i32_0 : i32, i32
  }
  func.func @transform_20(%arg0: i32) -> (i32, i32, i32) {
    %c0_i32 = arith.constant 0 : i32
    %c0_i32_0 = arith.constant 0 : i32
    %c0_i32_1 = arith.constant 0 : i32
    return %arg0, %c0_i32, %c0_i32_0 : i32, i32, i32
  }
}

</mosaic_0001>

<bundles_post_ra>
// kernel: tpu_custom_call.1
= control target key start
LH: loop header
LB: loop body
LE: loop exit
PB: predicated region body
PF: predicated region fallthrough
CT: control target
= control target key end

     0   :  { %s4300_s0 = inlined_call_operand.hbm [shape: f32[2,8,32], index: 0, kind: input, shape index: {}]   ;;  %s4301_s1 = inlined_call_operand.hbm [shape: f32[2,1,8], index: 1, kind: input, shape index: {}]   ;;  %s4302_s2 = inlined_call_operand.hbm [shape: f32[1,32], index: 2, kind: input, shape index: {}]   ;;  %s4303_s3 = inlined_call_operand.hbm [shape: f32[1,32], index: 3, kind: input, shape index: {}]   ;;  %s4304_s4 = inlined_call_operand.vmem [shape: bf16[2,32,128], index: 4, kind: input, shape index: {}]   ;;  %s4305_s5 = inlined_call_operand.hbm [shape: f32[2,1,128], index: 5, kind: input, shape index: {}]   ;;  %s4306_s6 = inlined_call_operand.vmem [shape: bf16[2,2,16,32], index: 6, kind: input, shape index: {}]   ;;  %s4307_s7 = inlined_call_operand.hbm [shape: f32[2,1,32], index: 7, kind: input, shape index: {}]   ;;  %s4308_s8 = inlined_call_operand.hbm [shape: f32[2,1,32], index: 8, kind: input, shape index: {}]   ;;  %s4309_s9 = inlined_call_operand.hbm [shape: f32[2,1,32], index: 9, kind: input, shape index: {}]   ;;  %s4310_s10 = inlined_call_operand.vmem [shape: bf16[2,32,64], index: 10, kind: input, shape index: {}]   ;;  %s4311_s11 = inlined_call_operand.hbm [shape: f32[2,1,64], index: 11, kind: input, shape index: {}]   ;;  %s4312_s12 = inlined_call_operand.vmem [shape: bf16[2,64,32], index: 12, kind: input, shape index: {}]   ;;  %s4313_s13 = inlined_call_operand.hbm [shape: f32[2,1,32], index: 13, kind: input, shape index: {}]   ;;  %s4314_s14 = inlined_call_operand.hbm [shape: f32[2,1,32], index: 14, kind: input, shape index: {}]   ;;  %s4315_s15 = inlined_call_operand.hbm [shape: f32[2,1,32], index: 15, kind: input, shape index: {}]   ;;  %s4316_s16 = inlined_call_operand.vmem [shape: bf16[32,32], index: 16, kind: input, shape index: {}]   ;;  %s4317_s17 = inlined_call_operand.hbm [shape: f32[1,32], index: 17, kind: input, shape index: {}]   ;;  %s4318_s18 = inlined_call_operand.vmem [shape: bf16[32,128], index: 18, kind: input, shape index: {}]   ;;  %s4319_s19 = inlined_call_operand.vmem [shape: f32[1,128], index: 19, kind: input, shape index: {}]   ;;  %s4320_s20 = inlined_call_operand.hbm [shape: f32[2,1,128], index: 20, kind: output, shape index: {}]  }
   0x1   :  { %4347 = sst [smem:[#allocation35_spill]] %s4300_s0 }
   0x2   :  { %4348 = sst [smem:[#allocation36_spill]] %s4301_s1 }
   0x3   :  { %4349 = sst [smem:[#allocation37_spill]] %s4302_s2 }
   0x4   :  { %4350 = sst [smem:[#allocation38_spill]] %s4303_s3 }
   0x5   :  { %4351 = sst [smem:[#allocation39_spill]] %s4304_s4 }
   0x6   :  { %4352 = sst [smem:[#allocation40_spill]] %s4305_s5 }
   0x7   :  { %4353 = sst [smem:[#allocation41_spill]] %s4306_s6 }
   0x8   :  { %4354 = sst [smem:[#allocation42_spill]] %s4307_s7 }
   0x9   :  { %4355 = sst [smem:[#allocation43_spill]] %s4308_s8 }
   0xa   :  { %4356 = sst [smem:[#allocation44_spill]] %s4310_s10 }
   0xb   :  { %4357 = sst [smem:[#allocation45_spill]] %s4312_s12 }
   0xc   :  { %4358 = sst [smem:[#allocation46_spill]] %s4316_s16 }
   0xd   :  { %4359 = sst [smem:[#allocation47_spill]] %s4318_s18 }
   0xe   :  { %4360 = sst [smem:[#allocation48_spill]] %s4319_s19 }
   0xf   :  { %4361 = sst [smem:[#allocation49_spill]] %s4320_s20 }
  0x10   :  { %25 = vsyncpa [#allocation3], 0 }
  0x11   :  { %27 = vsyncpa [#allocation3 + $0x1], 0 }
  0x12   :  { %28 = vsyncpa [#allocation6], 0 }
  0x13   :  { %30 = vsyncpa [#allocation6 + $0x1], 0 }
  0x14   :  { %31 = vsyncpa [#allocation9], 0 }
  0x15   :  { %32 = vsyncpa [#allocation12], 0 }
  0x16   :  { %33 = vsyncpa [#allocation15], 0 }
  0x17   :  { %34 = vsyncpa [#allocation18], 0 }
  0x18   :  { %35 = vsyncpa [#allocation21], 0 }
  0x19   :  { %36 = vsyncpa [#allocation4], 0 }
  0x1a   :  { %38 = vsyncpa [#allocation4 + $0x1], 0  ;;  %s3595_s1 = smov 0   ;;  %s3597_s22 = smov 0  }
  0x1b   :  { %s3599_s23 = smov 0   ;;  %s3601_s24 = smov 0  }
  0x1c LB: > { %s3469_s2 = smov [#allocation7]   ;;  %s3616_s3 = sadd.s32 4294967295, %s3467_s24   ;;  %s3467_s24 = sphi %s3601_s24, %s4412_s24   ;;  %s3463_s23 = sphi %s3599_s23, %s4411_s23   ;;  %s3459_s22 = sphi %s3597_s22, %s4410_s22   ;;  %s3455_s1 = sphi %s3595_s1, %s4409_s1  }
  0x1d   : > { %s518_s25 = sshll.u32 %s3469_s2, 4  ;;  %4362 = sst [smem:[#allocation33_spill]] %s3616_s3  ;;  %s3621_s25 = int_to_ptr.vmem [resolvable:$true] %s518_s25 }
  0x1e   : > { %p2467_p0 = scmp.ge.s32.totalorder %s3467_s24, 1  ;;  %p4338_p1 = scmp.eq.s32.totalorder %s3616_s3, 0 }
  0x1f   : > { %p505_p2 = scmp.lt.s32.totalorder %s3467_s24, 3  ;;  %s3470_s27 = smov [#allocation8]  }
  0x20   : > { %s529_s28 = sshll.u32 %s3470_s27, 4  ;;  %s3471_s29 = smov [#allocation11]   ;;  %s3630_s28 = int_to_ptr.vmem [resolvable:$true] %s529_s28 }
  0x21   : > { %p3623_p3 = pnand %p2467_p0, %p505_p2  ;;  %s558_s30 = sshll.u32 %s3471_s29, 4  ;;  %s3638_s30 = int_to_ptr.vmem [resolvable:$true] %s558_s30 }
  0x22   : > { %s4366_s2 = sld [smem:[#allocation37_spill]] }
  0x23   : > { %s4363_s26 = scalar_select %p3623_p3, 1, 0 }
  0x24   : > { %p2830_p5 = pneg %p3623_p3 }
  0x25   : > { %4364 = sst [smem:[#allocation34_spill]] %s4363_s26 }
  0x26   : > { %p3634_p6 = pnand %p2830_p5, %p4338_p1 }
  0x28   : > { %s3005_s20 = scalar_lea.hbm %s4366_s2, 16  ;;  %p3648_p8 = pneg %p3634_p6 }
  0x29   : > { %p3006_p7 = scmp.ne.s32.totalorder %s4366_s2, %s3005_s20  ;;  %p3012_p11 = scmp.lt.u32.totalorder %s3005_s20, %s4366_s2 }
  0x2b   : > { %p3008_p9 = pnand %p3648_p8, %p3006_p7 }
  0x2d   : > { %p3009_p10 = pneg %p3008_p9 }
  0x2f   : > { %p3014_p12 = pnand %p3012_p11, %p3009_p10 }
  0x31   : > { %3017 = shalt.err (!%p3014_p12)
}
  0x32   : > { %s3018_s18 = scalar_lea.vmem %s3621_s25, 16  ;;  %s3025_s19 = scalar_lea.vmem %s3621_s25, 32 }
  0x33   : > { %p3019_p13 = scmp.ne.s32.totalorder %s3621_s25, %s3018_s18  ;;  %p3026_p5 = scmp.lt.s32.totalorder %s3621_s25, %s3621_s25 }
  0x34   : > { %p3027_p7 = scmp.lt.s32.totalorder %s3025_s19, %s3018_s18 }
  0x35   : > { %p3021_p0 = pnand %p3019_p13, %p3648_p8 }
  0x36   : > { %p3028_p9 = por %p3027_p7, %p3026_p5 }
  0x37   : > { %p3022_p2 = pneg %p3021_p0 }
  0x39   : > { %p3029_p4 = pnand %p3028_p9, %p3022_p2 }
  0x3b   : > { %3032 = shalt.err (!%p3029_p4)
}
  0x3c   : > { %2833 = dma.hbm_to_vmem [thread:$0]  (!%p3634_p6), %s4366_s2, 16, %s3621_s25, [#allocation6]  }
  0x3d   : > { %s4368_s29 = sld [smem:[#allocation38_spill]] }
  0x43   : > { %s3033_s12 = scalar_lea.hbm %s4368_s29, 16 }
  0x44   : > { %p3034_p10 = scmp.ne.s32.totalorder %s4368_s29, %s3033_s12  ;;  %p3040_p4 = scmp.lt.u32.totalorder %s3033_s12, %s4368_s29 }
  0x46   : > { %p3036_p11 = pnand %p3034_p10, %p3648_p8 }
  0x48   : > { %p3037_p12 = pneg %p3036_p11 }
  0x4a   : > { %p3042_p13 = pnand %p3040_p4, %p3037_p12 }
  0x4c   : > { %3045 = shalt.err (!%p3042_p13)
}
  0x4d   : > { %s3046_s25 = scalar_lea.vmem %s3630_s28, 16  ;;  %s3053_s6 = scalar_lea.vmem %s3630_s28, 32 }
  0x4e   : > { %p3047_p0 = scmp.ne.s32.totalorder %s3630_s28, %s3046_s25  ;;  %p3054_p7 = scmp.lt.s32.totalorder %s3630_s28, %s3630_s28 }
  0x4f   : > { %p3055_p9 = scmp.lt.s32.totalorder %s3053_s6, %s3046_s25 }
  0x50   : > { %p3049_p2 = pnand %p3047_p0, %p3648_p8 }
  0x51   : > { %p3056_p10 = por %p3055_p9, %p3054_p7 }
  0x52   : > { %p3050_p5 = pneg %p3049_p2 }
  0x54   : > { %p3057_p11 = pnand %p3056_p10, %p3050_p5 }
  0x56   : > { %3060 = shalt.err (!%p3057_p11)
}
  0x57   : > { %2836 = dma.hbm_to_vmem [thread:$0]  (!%p3634_p6), %s4368_s29, 16, %s3630_s28, [#allocation9]  }
  0x58   : > { %s4369_s7 = sld [smem:[#allocation42_spill]] }
  0x5e   : > { %s3061_s0 = scalar_lea.hbm %s4369_s7, 32 }
  0x5f   : > { %p3062_p12 = scmp.ne.s32.totalorder %s4369_s7, %s3061_s0  ;;  %p3068_p0 = scmp.lt.u32.totalorder %s3061_s0, %s4369_s7 }
  0x61   : > { %p3064_p4 = pnand %p3062_p12, %p3648_p8 }
  0x63   : > { %p3065_p13 = pneg %p3064_p4 }
  0x65   : > { %p3070_p2 = pnand %p3068_p0, %p3065_p13 }
  0x67   : > { %3073 = shalt.err (!%p3070_p2)
}
  0x68   : > { %s3074_s28 = scalar_lea.vmem %s3638_s30, 32  ;;  %p3082_p10 = scmp.lt.s32.totalorder %s3638_s30, %s3638_s30 }
  0x69   : > { %p3075_p5 = scmp.ne.s32.totalorder %s3638_s30, %s3074_s28  ;;  %p3083_p11 = scmp.lt.s32.totalorder %s3074_s28, %s3074_s28 }
  0x6b   : > { %p3077_p7 = pnand %p3075_p5, %p3648_p8  ;;  %p3084_p12 = por %p3083_p11, %p3082_p10 }
  0x6d   : > { %p3078_p9 = pneg %p3077_p7 }
  0x6f   : > { %p3085_p4 = pnand %p3084_p12, %p3078_p9 }
  0x71   : > { %3088 = shalt.err (!%p3085_p4)
}
  0x72   : > { %s3472_s6 = smov 16   ;;  %s3473_s10 = smov 1  }
  0x73   : > { %2842 = dma.hbm_to_vmem [thread:$0]  (!%p3634_p6), %s4369_s7, 32, %s3638_s30, [#allocation12], %s3472_s6, %s3472_s6, %s3473_s10  }
  0x74   : > { %s3474_s20 = smov [#allocation14]   ;;  %s3475_s21 = smov [#allocation17]  }
  0x75   : > { %s584_s0 = sshll.u32 %s3474_s20, 4  ;;  %s616_s18 = sshll.u32 %s3475_s21, 4  ;;  %s585_s0 = int_to_ptr.vmem [resolvable:$true] %s584_s0  ;;  %s617_s18 = int_to_ptr.vmem [resolvable:$true] %s616_s18 }
  0x76   : > { %s3089_s28 = scalar_lea.hbm %s4309_s9, 32 }
  0x77   : > { %p3090_p13 = scmp.ne.s32.totalorder %s4309_s9, %s3089_s28  ;;  %p3096_p5 = scmp.lt.u32.totalorder %s3089_s28, %s4309_s9 }
  0x79   : > { %p3092_p0 = pnand %p3090_p13, %p3648_p8 }
  0x7b   : > { %p3093_p2 = pneg %p3092_p0 }
  0x7d   : > { %p3098_p7 = pnand %p3096_p5, %p3093_p2 }
  0x7f   : > { %3101 = shalt.err (!%p3098_p7)
}
  0x80   : > { %s3102_s30 = scalar_lea.vmem %s585_s0, 32  ;;  %p3110_p12 = scmp.lt.s32.totalorder %s585_s0, %s585_s0 }
  0x81   : > { %p3103_p9 = scmp.ne.s32.totalorder %s585_s0, %s3102_s30  ;;  %p3111_p4 = scmp.lt.s32.totalorder %s3102_s30, %s3102_s30 }
  0x83   : > { %p3105_p10 = pnand %p3103_p9, %p3648_p8  ;;  %p3112_p1 = por %p3111_p4, %p3110_p12 }
  0x85   : > { %p3106_p11 = pneg %p3105_p10 }
  0x87   : > { %p3113_p3 = pnand %p3112_p1, %p3106_p11 }
  0x89   : > { %3116 = shalt.err (!%p3113_p3)
}
  0x8a   : > { %2848 = dma.hbm_to_vmem [thread:$0]  (!%p3634_p6), %s4309_s9, 32, %s585_s0, [#allocation15], %s3472_s6, %s3472_s6, %s3473_s10  }
  0x8b   : > { %s3117_s12 = scalar_lea.hbm %s4313_s13, 32 }
  0x8c   : > { %p3118_p1 = scmp.ne.s32.totalorder %s4313_s13, %s3117_s12  ;;  %p3124_p0 = scmp.lt.u32.totalorder %s3117_s12, %s4313_s13 }
  0x8e   : > { %p3120_p3 = pnand %p3118_p1, %p3648_p8 }
  0x90   : > { %p3121_p13 = pneg %p3120_p3 }
  0x92   : > { %p3126_p2 = pnand %p3124_p0, %p3121_p13 }
  0x94   : > { %3129 = shalt.err (!%p3126_p2)
}
  0x95   : > { %s3130_s25 = scalar_lea.vmem %s617_s18, 32  ;;  %p3138_p10 = scmp.lt.s32.totalorder %s617_s18, %s617_s18 }
  0x96   : > { %p3131_p5 = scmp.ne.s32.totalorder %s617_s18, %s3130_s25  ;;  %p3139_p11 = scmp.lt.s32.totalorder %s3130_s25, %s3130_s25 }
  0x98   : > { %p3133_p7 = pnand %p3131_p5, %p3648_p8  ;;  %p3140_p12 = por %p3139_p11, %p3138_p10 }
  0x9a   : > { %p3134_p9 = pneg %p3133_p7 }
  0x9c   : > { %p3141_p4 = pnand %p3140_p12, %p3134_p9 }
  0x9e   : > { %3144 = shalt.err (!%p3141_p4)
}
  0x9f   : > { %2854 = dma.hbm_to_vmem [thread:$0]  (!%p3634_p6), %s4313_s13, 32, %s617_s18, [#allocation18], %s3472_s6, %s3472_s6, %s3473_s10  }
  0xa0   : > { %s3476_s30 = smov [#allocation20]   ;;  %s3477_s26 = smov [#allocation10]  }
  0xa1   : > { %s642_s3 = sshll.u32 %s3476_s30, 4  ;;  %s542_s2 = sshll.u32 %s3477_s26, 4  ;;  %s643_s3 = int_to_ptr.vmem [resolvable:$true] %s642_s3  ;;  %s543_s2 = int_to_ptr.vmem [resolvable:$true] %s542_s2 }
  0xa2   : > { %s3145_s16 = scalar_lea.hbm %s4315_s15, 32 }
  0xa3   : > { %p3146_p1 = scmp.ne.s32.totalorder %s4315_s15, %s3145_s16  ;;  %p3152_p0 = scmp.lt.u32.totalorder %s3145_s16, %s4315_s15 }
  0xa5   : > { %p3148_p3 = pnand %p3146_p1, %p3648_p8 }
  0xa7   : > { %p3149_p13 = pneg %p3148_p3 }
  0xa9   : > { %p3154_p2 = pnand %p3152_p0, %p3149_p13 }
  0xab   : > { %3157 = shalt.err (!%p3154_p2)
}
  0xac   : > { %s3158_s18 = scalar_lea.vmem %s643_s3, 32  ;;  %p3166_p10 = scmp.lt.s32.totalorder %s643_s3, %s643_s3 }
  0xad   : > { %p3159_p5 = scmp.ne.s32.totalorder %s643_s3, %s3158_s18  ;;  %p3167_p11 = scmp.lt.s32.totalorder %s3158_s18, %s3158_s18 }
  0xaf   : > { %p3161_p7 = pnand %p3159_p5, %p3648_p8  ;;  %p3168_p12 = por %p3167_p11, %p3166_p10 }
  0xb1   : > { %p3162_p9 = pneg %p3161_p7 }
  0xb3   : > { %p3169_p4 = pnand %p3168_p12, %p3162_p9 }
  0xb5   : > { %3172 = shalt.err (!%p3169_p4)
}
  0xb6   : > { %2860 = dma.hbm_to_vmem [thread:$0]  (!%p3634_p6), %s4315_s15, 32, %s643_s3, [#allocation21], %s3472_s6, %s3472_s6, %s3473_s10  }
  0xb7   : > { %s4370_s5 = sld [smem:[#allocation40_spill]] }
  0xbd   : > { %s3173_s29 = scalar_lea.hbm %s4370_s5, 32 }
  0xbe   : > { %p3174_p1 = scmp.ne.s32.totalorder %s4370_s5, %s3173_s29  ;;  %p3180_p0 = scmp.lt.u32.totalorder %s3173_s29, %s4370_s5 }
  0xc0   : > { %p3176_p3 = pnand %p3174_p1, %p3648_p8 }
  0xc2   : > { %p3177_p13 = pneg %p3176_p3 }
  0xc4   : > { %p3182_p2 = pnand %p3180_p0, %p3177_p13 }
  0xc6   : > { %3185 = shalt.err (!%p3182_p2)
}
  0xc7   : > { %s3186_s19 = scalar_lea.vmem %s543_s2, 32  ;;  %p3194_p10 = scmp.lt.s32.totalorder %s543_s2, %s543_s2 }
  0xc8   : > { %p3187_p5 = scmp.ne.s32.totalorder %s543_s2, %s3186_s19  ;;  %p3195_p11 = scmp.lt.s32.totalorder %s3186_s19, %s3186_s19 }
  0xca   : > { %p3189_p7 = pnand %p3187_p5, %p3648_p8  ;;  %p3196_p12 = por %p3195_p11, %p3194_p10 }
  0xcc   : > { %p3190_p9 = pneg %p3189_p7 }
  0xce   : > { %p3197_p4 = pnand %p3196_p12, %p3190_p9 }
  0xd0   : > { %3200 = shalt.err (!%p3197_p4)
}
  0xd1   : > { %2839 = dma.hbm_to_vmem [thread:$0]  (!%p3634_p6), %s4370_s5, 32, %s543_s2, [#allocation9], %s3472_s6, %s3472_s6, %s3473_s10  }
  0xd2   : > { %s3478_s18 = smov [#allocation13]   ;;  %s3479_s28 = smov [#allocation16]  }
  0xd3   : > { %s571_s0 = sshll.u32 %s3478_s18, 4  ;;  %s600_s30 = sshll.u32 %s3479_s28, 4  ;;  %s572_s0 = int_to_ptr.vmem [resolvable:$true] %s571_s0  ;;  %s601_s30 = int_to_ptr.vmem [resolvable:$true] %s600_s30 }
  0xd4   : > { %s4371_s8 = sld [smem:[#allocation43_spill]] }
  0xda   : > { %s3201_s12 = scalar_lea.hbm %s4371_s8, 32 }
  0xdb   : > { %p3202_p1 = scmp.ne.s32.totalorder %s4371_s8, %s3201_s12  ;;  %p3208_p0 = scmp.lt.u32.totalorder %s3201_s12, %s4371_s8 }
  0xdd   : > { %p3204_p3 = pnand %p3202_p1, %p3648_p8 }
  0xdf   : > { %p3205_p13 = pneg %p3204_p3 }
  0xe1   : > { %p3210_p2 = pnand %p3208_p0, %p3205_p13 }
  0xe3   : > { %3213 = shalt.err (!%p3210_p2)
}
  0xe4   : > { %s3214_s2 = scalar_lea.vmem %s572_s0, 32  ;;  %p3222_p10 = scmp.lt.s32.totalorder %s572_s0, %s572_s0 }
  0xe5   : > { %p3215_p5 = scmp.ne.s32.totalorder %s572_s0, %s3214_s2  ;;  %p3223_p11 = scmp.lt.s32.totalorder %s3214_s2, %s3214_s2 }
  0xe7   : > { %p3217_p7 = pnand %p3215_p5, %p3648_p8  ;;  %p3224_p12 = por %p3223_p11, %p3222_p10 }
  0xe9   : > { %p3218_p9 = pneg %p3217_p7 }
  0xeb   : > { %p3225_p4 = pnand %p3224_p12, %p3218_p9 }
  0xed   : > { %3228 = shalt.err (!%p3225_p4)
}
  0xee   : > { %2845 = dma.hbm_to_vmem [thread:$0]  (!%p3634_p6), %s4371_s8, 32, %s572_s0, [#allocation12], %s3472_s6, %s3472_s6, %s3473_s10  }
  0xef   : > { %s3229_s26 = scalar_lea.hbm %s4311_s11, 32 }
  0xf0   : > { %p3230_p1 = scmp.ne.s32.totalorder %s4311_s11, %s3229_s26  ;;  %p3236_p0 = scmp.lt.u32.totalorder %s3229_s26, %s4311_s11 }
  0xf2   : > { %p3232_p3 = pnand %p3230_p1, %p3648_p8 }
  0xf4   : > { %p3233_p13 = pneg %p3232_p3 }
  0xf6   : > { %p3238_p2 = pnand %p3236_p0, %p3233_p13 }
  0xf8   : > { %3241 = shalt.err (!%p3238_p2)
}
  0xf9   : > { %s3242_s21 = scalar_lea.vmem %s601_s30, 32  ;;  %p3250_p10 = scmp.lt.s32.totalorder %s601_s30, %s601_s30 }
  0xfa   : > { %p3243_p5 = scmp.ne.s32.totalorder %s601_s30, %s3242_s21  ;;  %p3251_p11 = scmp.lt.s32.totalorder %s3242_s21, %s3242_s21 }
  0xfc   : > { %p3245_p7 = pnand %p3243_p5, %p3648_p8  ;;  %p3252_p12 = por %p3251_p11, %p3250_p10 }
  0xfe   : > { %p3246_p9 = pneg %p3245_p7 }
 0x100   : > { %p3253_p4 = pnand %p3252_p12, %p3246_p9 }
 0x102   : > { %3256 = shalt.err (!%p3253_p4)
}
 0x103   : > { %2851 = dma.hbm_to_vmem [thread:$0]  (!%p3634_p6), %s4311_s11, 32, %s601_s30, [#allocation15], %s3472_s6, %s3472_s6, %s3473_s10  }
 0x104   : > { %s3480_s2 = smov [#allocation19]   ;;  %s3481_s25 = smov [#allocation22]  }
 0x105   : > { %s629_s3 = sshll.u32 %s3480_s2, 4  ;;  %s659_s18 = sshll.u32 %s3481_s25, 4  ;;  %s630_s3 = int_to_ptr.vmem [resolvable:$true] %s629_s3  ;;  %s660_s18 = int_to_ptr.vmem [resolvable:$true] %s659_s18 }
 0x106   : > { %s3257_s29 = scalar_lea.hbm %s4314_s14, 32 }
 0x107   : > { %p3258_p1 = scmp.ne.s32.totalorder %s4314_s14, %s3257_s29  ;;  %p3264_p0 = scmp.lt.u32.totalorder %s3257_s29, %s4314_s14 }
 0x109   : > { %p3260_p3 = pnand %p3258_p1, %p3648_p8 }
 0x10b   : > { %p3261_p13 = pneg %p3260_p3 }
 0x10d   : > { %p3266_p2 = pnand %p3264_p0, %p3261_p13 }
 0x10f   : > { %3269 = shalt.err (!%p3266_p2)
}
 0x110   : > { %s3270_s30 = scalar_lea.vmem %s630_s3, 32  ;;  %p3278_p10 = scmp.lt.s32.totalorder %s630_s3, %s630_s3 }
 0x111   : > { %p3271_p5 = scmp.ne.s32.totalorder %s630_s3, %s3270_s30  ;;  %p3279_p11 = scmp.lt.s32.totalorder %s3270_s30, %s3270_s30 }
 0x113   : > { %p3273_p7 = pnand %p3271_p5, %p3648_p8  ;;  %p3280_p12 = por %p3279_p11, %p3278_p10 }
 0x115   : > { %p3274_p9 = pneg %p3273_p7 }
 0x117   : > { %p3281_p4 = pnand %p3280_p12, %p3274_p9 }
 0x119   : > { %3284 = shalt.err (!%p3281_p4)
}
 0x11a   : > { %2857 = dma.hbm_to_vmem [thread:$0]  (!%p3634_p6), %s4314_s14, 32, %s630_s3, [#allocation18], %s3472_s6, %s3472_s6, %s3473_s10  }
 0x11b   : > { %s3285_s28 = scalar_lea.hbm %s4317_s17, 16 }
 0x11c   : > { %p3286_p1 = scmp.ne.s32.totalorder %s4317_s17, %s3285_s28  ;;  %p3292_p0 = scmp.lt.u32.totalorder %s3285_s28, %s4317_s17 }
 0x11e   : > { %p3288_p3 = pnand %p3286_p1, %p3648_p8 }
 0x120   : > { %p3289_p13 = pneg %p3288_p3 }
 0x122   : > { %p3294_p2 = pnand %p3292_p0, %p3289_p13 }
 0x124   : > { %3297 = shalt.err (!%p3294_p2)
}
 0x125   : > { %s3298_s20 = scalar_lea.vmem %s660_s18, 16  ;;  %s3305_s6 = scalar_lea.vmem %s660_s18, 32 }
 0x126   : > { %p3299_p5 = scmp.ne.s32.totalorder %s660_s18, %s3298_s20  ;;  %p3306_p10 = scmp.lt.s32.totalorder %s660_s18, %s660_s18 }
 0x127   : > { %p3307_p11 = scmp.lt.s32.totalorder %s3305_s6, %s3298_s20 }
 0x128   : > { %p3301_p7 = pnand %p3299_p5, %p3648_p8 }
 0x129   : > { %p3308_p12 = por %p3307_p11, %p3306_p10 }
 0x12a   : > { %p3302_p9 = pneg %p3301_p7 }
 0x12c   : > { %p3309_p4 = pnand %p3308_p12, %p3302_p9 }
 0x12e   : > { %3312 = shalt.err (!%p3309_p4)
}
 0x12f   : > { %s4372_s27 = sld [smem:[#allocation33_spill]]  ;;  %s2466_s21 = sadd.s32 4294967294, %s3467_s24  }
 0x130   : > { %2863 = dma.hbm_to_vmem [thread:$0]  (!%p3634_p6), %s4317_s17, 16, %s660_s18, [#allocation21]  }
 0x131   : > { %s3887_s4 = sadd.s32 1, %s3467_s24   ;;  %s51_s30 = sadd.s32 1, %s3463_s23 }
 0x132   : > { %s48_s0 = ssub.s32 %s3467_s24, %s3887_s4  ;;  %p58_p8 = scmp.ne.s32.totalorder %s3463_s23, %s3459_s22 }
 0x133   : > { %p49_p1 = scmp.eq.s32.totalorder %s48_s0, 0  ;;  %p59_p3 = scmp.eq.s32.totalorder %s3467_s24, 0 }
 0x134   : > { %p64_p13 = scmp.ne.s32.totalorder %s3459_s22, %s3455_s1  ;;  %p498_p9 = scmp.eq.s32.totalorder %s2466_s21, 1 }
 0x135   : > { %p492_p0 = scmp.eq.s32.totalorder %s4372_s27, 1  ;;  %p60_p2 = por %p59_p3, %p58_p8 }
 0x136   : > { %s3899_s19 = scalar_select %p49_p1, %s3463_s23, %s51_s30  }
 0x137   : > { %p4373_p5 = scmp.eq.s32.totalorder %s4372_s27, 0  ;;  %p3907_p6 = por %p492_p0, %p58_p8 }
 0x138   : > { %p2886_p10 = scmp.lt.s32.totalorder %s3467_s24, 2  ;;  %s3913_s25 = sand.u32 1, %s3463_s23  }
 0x139   : > { %p3903_p7 = por %p4373_p5, %p64_p13  ;;  %p3915_p11 = por %p498_p9, %p64_p13 }
 0x13a   : > { %s4375_s2 = scalar_select %p3907_p6, 1, 0 }
 0x13b   : > { %s4374_s18 = scalar_select %p3903_p7, 1, 0 }
 0x13c   : > { %s4376_s28 = scalar_select %p3915_p11, 1, 0 }
 0x13d   : > { %s2480_s26 = sshll.u32 %s3913_s25, 3  ;;  %s2481_s29 = sshll.u32 %s3467_s24, 7 }
 0x13e   : > { %s4377_s20 = sld [smem:[#allocation35_spill]]  ;;  %s680_s10 = scalar_lea.vmem [#allocation2], %s2480_s26 }
 0x13f   : > { %s687_s3 = sshll.u32 %s680_s10, 4  ;;  %p3926_p12 = pnand %p2886_p10, %p60_p2  ;;  %s3930_s3 = int_to_ptr.vmem [resolvable:$true] %s687_s3 }
 0x140   : > { %s677_s30 = scalar_lea.sflag [#allocation3], %s3913_s25 }
 0x141   : > { %p3315_p8 = pneg %p3926_p12 }
 0x144   : > { %s3924_s6 = scalar_lea.hbm %s4377_s20, %s2481_s29  ;;  %s3318_s12 = scalar_lea.hbm %s4377_s20, 256 }
 0x145   : > { %s3313_s0 = scalar_lea.hbm %s3924_s6, 128  ;;  %p3319_p13 = scmp.lt.u32.totalorder %s3924_s6, %s4377_s20 }
 0x146   : > { %p3314_p4 = scmp.ne.s32.totalorder %s3924_s6, %s3313_s0  ;;  %p3320_p0 = scmp.lt.u32.totalorder %s3318_s12, %s3313_s0 }
 0x147   : > { %p3322_p5 = scmp.lt.u32.totalorder %s3313_s0, %s3924_s6 }
 0x148   : > { %p3316_p1 = pnand %p3315_p8, %p3314_p4  ;;  %p3321_p2 = por %p3320_p0, %p3319_p13 }
 0x14a   : > { %p3317_p3 = pneg %p3316_p1  ;;  %p3323_p9 = por %p3322_p5, %p3321_p2 }
 0x14c   : > { %p3324_p10 = pnand %p3323_p9, %p3317_p3 }
 0x14e   : > { %3327 = shalt.err (!%p3324_p10)
}
 0x14f   : > { %s3328_s21 = scalar_lea.vmem %s3930_s3, 128  ;;  %s3482_s26 = smov [#allocation2]  }
 0x150   : > { %p3329_p4 = scmp.ne.s32.totalorder %s3930_s3, %s3328_s21  ;;  %s3333_s29 = sshll.u32 %s3482_s26, 4  ;;  %s3334_s29 = int_to_ptr.vmem [resolvable:$false] %s3333_s29 }
 0x151   : > { %s3335_s16 = scalar_lea.vmem %s3334_s29, 256  ;;  %p3336_p6 = scmp.lt.s32.totalorder %s3930_s3, %s3334_s29 }
 0x152   : > { %p3331_p1 = pnand %p3329_p4, %p3315_p8  ;;  %p3337_p13 = scmp.lt.s32.totalorder %s3335_s16, %s3328_s21 }
 0x154   : > { %p3332_p11 = pneg %p3331_p1  ;;  %p3338_p0 = por %p3337_p13, %p3336_p6 }
 0x156   : > { %p3339_p2 = pnand %p3338_p0, %p3332_p11 }
 0x158   : > { %3342 = shalt.err (!%p3339_p2)
}
 0x159   : > { %2867 = dma.hbm_to_vmem [thread:$0]  (!%p3926_p12), %s3924_s6, 128, %s3930_s3, %s677_s30  }
 0x15a   : > { %s2482_s0 = sshll.u32 %s3467_s24, 4  ;;  %s4379_s26 = sld [smem:[#allocation36_spill]] }
 0x15b   : > { %s697_s21 = scalar_lea.vmem [#allocation5], %s3913_s25  ;;  %s4380_s16 = sand.u32 1, %s3467_s24  }
 0x15c   : > { %s704_s29 = sshll.u32 %s697_s21, 4  ;;  %s695_s7 = scalar_lea.sflag [#allocation6], %s4380_s16  ;;  %s705_s29 = int_to_ptr.vmem [resolvable:$true] %s704_s29 }
 0x160   : > { %s3963_s5 = scalar_lea.hbm %s4379_s26, %s2482_s0  ;;  %s3348_s30 = scalar_lea.hbm %s4379_s26, 32 }
 0x161   : > { %s3343_s8 = scalar_lea.hbm %s3963_s5, 16  ;;  %p3349_p5 = scmp.lt.u32.totalorder %s3963_s5, %s4379_s26 }
 0x162   : > { %p3344_p6 = scmp.ne.s32.totalorder %s3963_s5, %s3343_s8  ;;  %p3350_p9 = scmp.lt.u32.totalorder %s3348_s30, %s3343_s8 }
 0x163   : > { %p3352_p4 = scmp.lt.u32.totalorder %s3343_s8, %s3963_s5 }
 0x164   : > { %p3346_p11 = pnand %p3344_p6, %p3315_p8  ;;  %p3351_p10 = por %p3350_p9, %p3349_p5 }
 0x166   : > { %p3347_p3 = pneg %p3346_p11  ;;  %p3353_p1 = por %p3352_p4, %p3351_p10 }
 0x168   : > { %p3354_p13 = pnand %p3353_p1, %p3347_p3 }
 0x16a   : > { %3357 = shalt.err (!%p3354_p13)
}
 0x16b   : > { %s3358_s25 = scalar_lea.vmem %s705_s29, 16  ;;  %s3483_s10 = smov [#allocation5]  }
 0x16c   : > { %p3359_p0 = scmp.ne.s32.totalorder %s705_s29, %s3358_s25  ;;  %s3363_s21 = sshll.u32 %s3483_s10, 4  ;;  %s3364_s21 = int_to_ptr.vmem [resolvable:$false] %s3363_s21 }
 0x16d   : > { %s3365_s16 = scalar_lea.vmem %s3364_s21, 32  ;;  %p3366_p11 = scmp.lt.s32.totalorder %s705_s29, %s3364_s21 }
 0x16e   : > { %p3361_p2 = pnand %p3359_p0, %p3315_p8  ;;  %p3367_p7 = scmp.lt.s32.totalorder %s3365_s16, %s3358_s25 }
 0x170   : > { %p3362_p6 = pneg %p3361_p2  ;;  %p3368_p5 = por %p3367_p7, %p3366_p11 }
 0x172   : > { %p3369_p9 = pnand %p3368_p5, %p3362_p6 }
 0x174   : > { %3372 = shalt.err (!%p3369_p9)
}
 0x175   : > { %2870 = dma.hbm_to_vmem [thread:$0]  (!%p3926_p12), %s3963_s5, 16, %s705_s29, %s695_s7  }
 0x176   : > { %s4381_s8 = sld [smem:[#allocation34_spill]] }
 0x17c   : > { %p4382_p3 = scmp.ne.s32.totalorder %s4381_s8, 0 }
 0x17d   : > { %s3990_s6 = sand.u32 (!%p4382_p3), 1, %s3459_s22   ;;  %p4383_p8 = scmp.ne.s32.totalorder (!%p4382_p3), %s4374_s18, 0 }
 0x17e   : > { %713 = sbr.rel (%p4382_p3) target bundleno = 6179 (0x1823), region = 100  ;;  %s2484_s3 = sshll.u32 (!%p4382_p3), %s3990_s6, 3 }
 0x17f   : > { %s716_s30 = scalar_lea.sflag (!%p4382_p3), [#allocation3], %s3990_s6  ;;  %s719_s0 = scalar_lea.vmem (!%p4382_p3), [#allocation2], %s2484_s3 }
 0x185   : > { %3418 = dma.done.wait (%p4383_p8), %s716_s30, 128  }
 0x186   : > { %3420 = vsyncadd (%p4383_p8), %s716_s30, 4294967168  ;;  %s4384_s27 = sld [smem:[#allocation33_spill]]  ;;  %s727_s29 = scalar_lea.vmem [#allocation5], %s3990_s6 }
 0x18c   : > { %s724_s5 = sand.u32 1, %s4384_s27  }
 0x18d   : > { %s725_s7 = scalar_lea.sflag [#allocation6], %s724_s5 }
 0x18e   : > { %3422 = dma.done.wait (%p4383_p8), %s725_s7, 16  }
 0x18f   : > { %3424 = vsyncadd (%p4383_p8), %s725_s7, 4294967280  ;;  %p4385_p7 = scmp.eq.s32.totalorder %s4384_s27, 0 }
 0x191   : > { %3426 = dma.done.wait (%p4385_p7), [#allocation6], 16   ;;  %p4386_p12 = pmov %p4385_p7 }
 0x192   : > { %p4387_p10 = pmov %p4385_p7 }
 0x193   : > { %3428 = vsyncadd (%p4386_p12), [#allocation6], 4294967280 }
 0x194   : > { %3430 = dma.done.wait (%p4387_p10), [#allocation9], 48   ;;  %p4388_p4 = pmov %p4385_p7 }
 0x196   : > { %3432 = vsyncadd (%p4388_p4), [#allocation9], 4294967248  ;;  %p4389_p1 = pmov %p4388_p4 }
 0x198   : > { %3434 = dma.done.wait (%p4389_p1), [#allocation12], 64   ;;  %p4390_p13 = pmov %p4389_p1 }
 0x199   : > { %p4391_p0 = pmov %p4389_p1 }
 0x19a   : > { %3436 = vsyncadd (%p4390_p13), [#allocation12], 4294967232 }
 0x19b   : > { %3438 = dma.done.wait (%p4391_p0), [#allocation15], 64   ;;  %p4392_p2 = pmov %p4391_p0 }
 0x19c   : > { %p4393_p6 = pmov %p4391_p0 }
 0x19d   : > { %3440 = vsyncadd (%p4392_p2), [#allocation15], 4294967232 }
 0x19e   : > { %3442 = dma.done.wait (%p4393_p6), [#allocation18], 64   ;;  %p4394_p11 = pmov %p4391_p0 }
 0x19f   : > { %p4395_p5 = pmov %p4391_p0 }
 0x1a0   : > { %3444 = vsyncadd (%p4394_p11), [#allocation18], 4294967232 }
 0x1a1   : > { %3446 = dma.done.wait (%p4395_p5), [#allocation21], 48   ;;  %p4396_p9 = pmov %p4391_p0 }
 0x1a2   : > { %vm835_vm0 = vcmask 261120   ;;  %v832_v0 = vld [vmem:[%s719_s0] sm:$0xff]  ;;  %s4397_s25 = sld [smem:[#allocation39_spill]]  ;;  %v3484_v8 = vmov 0.0   ;;  %vm3485_vm1 = vmmov 0   ;;  %s3486_s16 = smov 112  }
 0x1a3   : > { %3448 = vsyncadd (%p4396_p9), [#allocation21], 4294967248  ;;  %v836_v1 = vsel %vm835_vm0, %v832_v0, 0.0  ;;  %2636 = vmatprep.subr.bf16.mxu0 %v3484_v8  ;;  %2644 = vmatprep.subr.bf16.mxu1 %v3484_v8  ;;  %v2496_v14 = vld [vmem:[#allocation7] ss:$0 sm:$0xff]  ;;  %s3487_s8 = smov 96  }
 0x1a4   : > { %837 = vadd.xlane.f32.xlu0 %v836_v1  ;;  %2640 = vmatprep.mubr.msk.bf16.mxu0 %vm3485_vm1, %v3484_v8  ;;  %v2497_v16 = vld [vmem:[#allocation8] ss:$0 sm:$0xff]  ;;  %v2499_v20 = vld [vmem:[#allocation10] ss:$0 sm:$0xff]  ;;  %vm954_vm2 = vcmask 130048   ;;  %vm1050_vm3 = vcmask 64512  }
 0x1a5   : > { %2646 = vmatprep.mubr.msk.bf16.mxu1 %vm3485_vm1, %v3484_v8  ;;  %v4067_v37 = vld [vmem:[%s727_s29] ss:$0 sm:$0xff]  ;;  %s4342_s3 = smov 64   ;;  %vm1080_vm4 = vcmask 1043456   ;;  %s4398_s5 = sld [smem:[#allocation41_spill]]  ;;  %vm1427_vm5 = vcmask 523264  }
 0x1a6   : > { %s4399_s10 = sld [smem:[#allocation44_spill]]  ;;  %s4400_s29 = sld [smem:[#allocation45_spill]] }
 0x1a7   : > { %s4403_s7 = sld [smem:[#allocation47_spill]]  ;;  %s4404_s30 = sld [smem:[#allocation48_spill]] }
 0x1a8   : > { %v2949_v7 = vld [vmem:[%s4397_s25] sm:$0xff]   ;;  %v2950_v9 = vld [vmem:[%s4397_s25 + $0x8] sm:$0xff]   ;;  %s2581_s0 = sshll.u32 %s4384_s27, 4  ;;  %p4406_p8 = scmp.ne.s32.totalorder %s4375_s2, 0 }
 0x1a9   : > { %2637 = vmatpush3.bf16.msra.mxu0 %v2949_v7  ;;  %s3489_s21 = smov [#allocation23]  }
 0x1aa   : > { %2638 = vmatprep.subr.bf16.mxu0 %v3484_v8 }
 0x1ad   : > { %2639 = vmatpush3.bf16.msra.mxu0 %v2950_v9  ;;  %v2951_v9 = vld [vmem:[%s4398_s5] sm:$0xff]  }
 0x1ae   : > { %2650 = vmatprep.subr.bf16.mxu0 %v3484_v8 }
 0x231   : > { %v838_v2 = vpop.xlane.xlu0 %837 }
 0x232   : > { %v840_v3 = vmul.f32 0.03125, %v838_v2 }
 0x234   : > { %v841_v4 = vsub.f32 %v832_v0, %v840_v3 }
 0x236   : > { %v842_v5 = vmul.f32 %v841_v4, %v841_v4 }
 0x238   : > { %v843_v6 = vsel %vm835_vm0, %v842_v5, 0.0 }
 0x239   : > { %844 = vadd.xlane.f32.xlu0 %v843_v6 }
 0x2c6   : > { %v845_v10 = vpop.xlane.xlu0 %844 }
 0x2c7   : > { %v846_v11 = vmul.f32 0.03125, %v845_v10  ;;  %v2952_v10 = vld [vmem:[%s4398_s5 + $0x8] sm:$0xff]  }
 0x2c9   : > { %v847_v12 = vadd.f32 1e-12, %v846_v11 }
 0x2cb   : > { %2973 = vrsqrt.f32 %v847_v12 }
 0x2d5   : > { %v2974_v13 = vpop.eup %2973 }
 0x2d6   : > { %v849_v15 = vmul.f32 %v2974_v13, %v841_v4 }
 0x2d8   : > { %v856_v17 = vmul.f32 %v2496_v14, %v849_v15 }
 0x2da   : > { %v4044_v18 = vadd.f32 %v2497_v16, %v856_v17 }
 0x2dc   : > { %v871_v19 = vpack.c.bf16 %v4044_v18, %v4044_v18 }
 0x2de   : > { %2641 = vmatmul.mubr.msk.bf16.vlgmr.msra.gmra.mrb[0].mxu0 %vm835_vm0, %v871_v19 }
 0x2df   : > { %2652 = vmatprep.mubr.msk.bf16.mxu0 %vm3485_vm1, %v3484_v8 }
 0x3b1   : > { %v932_v21 = vpop.f32.mrb[0].mxu0 }
 0x3b2   : > { %v933_v22 = vadd.f32 %v2499_v20, %v932_v21  ;;  %v2642_v23 = vpop.f32.mrb[1].mxu0 }
 0x3b3   : > { %v935_v24 = vpop.f32.mrb[2].mxu0 }
 0x3b4   : > { %944 = vrot.lane.b32.xlu1 %v933_v22, %s3486_s16  ;;  %v2643_v25 = vpop.f32.mrb[3].mxu0  ;;  %v949_v26 = vpack.c.bf16 %v933_v22, %v933_v22  ;;  %v938_v27 = vmul.f32 0.25, %v933_v22 }
 0x3b6   : > { %v947_v32 = vpack.c.bf16 %v938_v27, %v938_v27 }
 0x3b8   : > { %952 = vrot.lane.b32.xlu1 %v949_v26, %s3487_s8 }
 0x3bc   : > { %940 = vrot.lane.b32.xlu1 %v938_v27, %s3486_s16  ;;  %v2513_v27 = vld [vmem:[#allocation11] ss:$0 sm:$0xff] }
 0x426   : > { %v945_v28 = vpop.permute.xlu1 %944 }
 0x427   : > { %v950_v29 = vpack.c.bf16 %v945_v28, %v945_v28 }
 0x429   : > { %1002 = vrot.lane.b32.xlu0 %v950_v29, %s3487_s8 }
 0x42a   : > { %v953_v30 = vpop.permute.xlu1 %952 }
 0x42b   : > { %v959_v31 = vsel %vm954_vm2, %v953_v30, 0 }
 0x42c   : > { %2645 = vmatpush3.bf16.xpose.msra.mxu1 %v959_v31 }
 0x42d   : > { %2656 = vmatprep.subr.bf16.mxu1 %v3484_v8 }
 0x42e   : > { %v941_v35 = vpop.permute.xlu1 %940 }
 0x42f   : > { %v948_v36 = vpack.c.bf16 %v941_v35, %v941_v35 }
 0x433   : > { %2647 = vmatmul.mubr.msk.bf16.vlgmr.msra.gmra.mrb[0].mxu1 %vm954_vm2, %v947_v32 }
 0x434   : > { %2658 = vmatprep.mubr.msk.bf16.mxu1 %vm3485_vm1, %v3484_v8 }
 0x49b   : > { %v1003_v33 = vpop.permute.xlu0 %1002 }
 0x49c   : > { %v1008_v34 = vsel %vm954_vm2, %v1003_v33, 0 }
 0x49d   : > { %2651 = vmatpush3.bf16.xpose.msra.mxu0 %v1008_v34 }
 0x49e   : > { %2662 = vmatprep.subr.bf16.mxu0 %v3484_v8 }
 0x4a4   : > { %2653 = vmatmul.mubr.msk.bf16.vlgmr.msra.gmra.mrb[4].mxu0 %vm954_vm2, %v948_v36 }
 0x4a5   : > { %2664 = vmatprep.mubr.msk.bf16.mxu0 %vm3485_vm1, %v3484_v8 }
 0x506   : > { %v995_v38 = vpop.f32.mrb[0].mxu1 }
 0x507   : > { %v996_v39 = vadd.f32 %v4067_v37, %v995_v38  ;;  %v2648_v40 = vpop.f32.mrb[1].mxu1 }
 0x508   : > { %v998_v41 = vpop.f32.mrb[2].mxu1 }
 0x509   : > { %v2649_v42 = vpop.f32.mrb[3].mxu1  ;;  %v1051_v43 = vsel %vm1050_vm3, %v996_v39, -inf  ;;  %v2953_v41 = vld [vmem:[%s4399_s10] sm:$0xff]  }
 0x50a   : > { %1052 = vmax.xlane.f32.xlu1 %v1051_v43 }
 0x577   : > { %v1044_v44 = vpop.f32.mrb[4].mxu0 }
 0x578   : > { %v1045_v45 = vadd.f32 %v4067_v37, %v1044_v44  ;;  %v2654_v46 = vpop.f32.mrb[5].mxu0 }
 0x579   : > { %v1047_v47 = vpop.f32.mrb[6].mxu0  ;;  %v2514_v46 = vld [vmem:[#allocation13] ss:$0 sm:$0xff] }
 0x57a   : > { %v2655_v48 = vpop.f32.mrb[7].mxu0  ;;  %v1054_v49 = vsel %vm1050_vm3, %v1045_v45, -inf }
 0x57b   : > { %1055 = vmax.xlane.f32.xlu0 %v1054_v49  ;;  %v2515_v48 = vld [vmem:[#allocation14] ss:$0 sm:$0xff] }
 0x591   : > { %1124 = vrot.lane.b32.xlu0 %v950_v29, %s4342_s3 }
 0x597   : > { %v1053_v50 = vpop.xlane.xlu1 %1052 }
 0x598   : > { %v1057_v51 = vsub.f32 %v996_v39, %v1053_v50 }
 0x59a   : > { %v1059_v52 = vmul.f32 1.442695, %v1057_v51 }
 0x59c   : > { %2975 = vpow2.f32 %v1059_v52  ;;  %v2955_v52 = vld [vmem:[%s4400_s29] sm:$0xff]  }
 0x5a6   : > { %v2976_v53 = vpop.eup %2975 }
 0x5a7   : > { %v1063_v54 = vsel %vm1050_vm3, %v2976_v53, 0.0 }
 0x5a8   : > { %1064 = vadd.xlane.f32.xlu1 %v1063_v54  ;;  %v2957_v54 = vld [vmem:[%s4400_s29 + $0x10] sm:$0xff]  }
 0x608   : > { %v1056_v55 = vpop.xlane.xlu0 %1055 }
 0x609   : > { %v1058_v56 = vsub.f32 %v1045_v45, %v1056_v55  ;;  %v2958_v55 = vld [vmem:[%s4400_s29 + $0x18] sm:$0xff]  }
 0x60b   : > { %v1061_v57 = vmul.f32 1.442695, %v1058_v56  ;;  %v2516_v56 = vld [vmem:[#allocation16] ss:$0 sm:$0xff] }
 0x60c   : > { %v1125_v58 = vpop.permute.xlu0 %1124 }
 0x60d   : > { %2977 = vpow2.f32 %v1061_v57  ;;  %v1130_v59 = vsel %vm1080_vm4, %v1125_v58, 0 }
 0x60e   : > { %2663 = vmatpush3.bf16.msra.mxu0 %v1130_v59 }
 0x60f   : > { %2674 = vmatprep.subr.bf16.mxu0 %v3484_v8 }
 0x617   : > { %v2978_v60 = vpop.eup %2977 }
 0x618   : > { %v1066_v61 = vsel %vm1050_vm3, %v2978_v60, 0.0 }
 0x619   : > { %1067 = vadd.xlane.f32.xlu1 %v1066_v61 }
 0x62a   : > { %1075 = vrot.lane.b32.xlu1 %v949_v26, %s4342_s3  ;;  %s830_s3 = scalar_lea.vmem [#allocation23], %s3990_s6 }
 0x62b   : > { %s2276_s18 = sshll.u32 %s830_s3, 4  ;;  %s4258_s18 = int_to_ptr.vmem [resolvable:$true] %s2276_s18 }
 0x62c   : > { %s3373_s27 = scalar_lea.vmem %s4258_s18, 16 }
 0x62d   : > { %p3374_p3 = scmp.ne.s32.totalorder %s4258_s18, %s3373_s27 }
 0x62f   : > { %p3375_p7 = pnand %p3374_p3, %p4406_p8 }
 0x631   : > { %p3376_p12 = pneg %p3375_p7 }
 0x635   : > { %v1065_v62 = vpop.xlane.xlu1 %1064 }
 0x636   : > { %2979 = vrcp.f32 %v1065_v62 }
 0x640   : > { %v2980_v63 = vpop.eup %2979 }
 0x641   : > { %v1071_v1 = vmul.f32 %v2980_v63, %v2976_v53  ;;  %v2956_v53 = vld [vmem:[%s4400_s29 + $0x8] sm:$0xff]  }
 0x643   : > { %v1073_v4 = vpack.c.bf16 %v1071_v1, %v1071_v1 }
 0x6a6   : > { %v1068_v0 = vpop.xlane.xlu1 %1067 }
 0x6a7   : > { %2981 = vrcp.f32 %v1068_v0 }
 0x6aa   : > { %v1076_v2 = vpop.permute.xlu1 %1075 }
 0x6ab   : > { %v1082_v3 = vsel %vm1080_vm4, %v1076_v2, 0 }
 0x6ac   : > { %2657 = vmatpush3.bf16.msra.mxu1 %v1082_v3 }
 0x6ad   : > { %2668 = vmatprep.subr.bf16.mxu1 %v3484_v8 }
 0x6af   : > { %2659 = vmatmul.mubr.msk.bf16.vlgmr.msra.gmra.mrb[4].mxu1 %vm1050_vm3, %v1073_v4  ;;  %v2520_v4 = vld [vmem:[#allocation17] ss:$0 sm:$0xff] }
 0x6b0   : > { %2670 = vmatprep.mubr.msk.bf16.mxu1 %vm3485_vm1, %v3484_v8  ;;  %2669 = vmatpush3.bf16.msra.mxu1 %v2952_v10 }
 0x6b1   : > { %v2982_v5 = vpop.eup %2981  ;;  %2680 = vmatprep.subr.bf16.mxu1 %v3484_v8 }
 0x6b2   : > { %v1072_v6 = vmul.f32 %v2982_v5, %v2978_v60 }
 0x6b4   : > { %v1074_v7 = vpack.c.bf16 %v1072_v6, %v1072_v6 }
 0x6b6   : > { %2665 = vmatmul.mubr.msk.bf16.vlgmr.msra.gmra.mrb[8].mxu0 %vm1050_vm3, %v1074_v7 }
 0x6b7   : > { %2676 = vmatprep.mubr.msk.bf16.mxu0 %vm3485_vm1, %v3484_v8  ;;  %2675 = vmatpush3.bf16.msra.mxu0 %v2951_v9 }
 0x6b8   : > { %2688 = vmatprep.subr.bf16.mxu0 %v3484_v8 }
 0x782   : > { %v1118_v11 = vpop.f32.mrb[4].mxu1 }
 0x783   : > { %v1172_v12 = vpack.c.bf16 %v1118_v11, %v1118_v11  ;;  %v2660_v13 = vpop.f32.mrb[5].mxu1 }
 0x784   : > { %v1121_v14 = vpop.f32.mrb[6].mxu1 }
 0x785   : > { %v2661_v15 = vpop.f32.mrb[7].mxu1  ;;  %2677 = vmatmul.mubr.msk.bf16.vlgmr.msra.gmra.mrb[12].mxu0 %vm954_vm2, %v1172_v12 }
 0x786   : > { %2696 = vmatprep.mubr.msk.bf16.mxu0 %vm3485_vm1, %v3484_v8  ;;  %2689 = vmatpush3.bf16.msra.mxu0 %v2955_v52 }
 0x787   : > { %2690 = vmatprep.subr.bf16.mxu0 %v3484_v8 }
 0x789   : > { %v1166_v16 = vpop.f32.mrb[8].mxu0 }
 0x78a   : > { %v1175_v17 = vpack.c.bf16 %v1166_v16, %v1166_v16  ;;  %v2666_v19 = vpop.f32.mrb[9].mxu0  ;;  %2691 = vmatpush3.bf16.msra.mxu0 %v2956_v53 }
 0x78b   : > { %v1169_v20 = vpop.f32.mrb[10].mxu0  ;;  %2692 = vmatprep.subr.bf16.mxu0 %v3484_v8  ;;  %v2959_v19 = vld [vmem:[%s4397_s25 + $0x10] sm:$0xff]  }
 0x78c   : > { %v2667_v21 = vpop.f32.mrb[11].mxu0  ;;  %2671 = vmatmul.mubr.msk.bf16.vlgmr.msra.gmra.mrb[8].mxu1 %vm954_vm2, %v1175_v17  ;;  %v2960_v20 = vld [vmem:[%s4397_s25 + $0x18] sm:$0xff]  }
 0x78d   : > { %2684 = vmatprep.mubr.msk.bf16.mxu1 %vm3485_vm1, %v3484_v8  ;;  %2681 = vmatpush3.bf16.msra.mxu1 %v2953_v41 }
 0x78e   : > { %2682 = vmatprep.subr.bf16.mxu1 %v3484_v8  ;;  %2693 = vmatpush3.bf16.msra.mxu0 %v2957_v54 }
 0x78f   : > { %2694 = vmatprep.subr.bf16.mxu0 %v3484_v8 }
 0x792   : > { %2695 = vmatpush3.bf16.msra.mxu0 %v2958_v55 }
 0x793   : > { %2714 = vmatprep.subr.bf16.mxu0 %v3484_v8 }
 0x858   : > { %v1271_v22 = vpop.f32.mrb[12].mxu0 }
 0x859   : > { %v2678_v23 = vpop.f32.mrb[13].mxu0 }
 0x85a   : > { %v1274_v24 = vpop.f32.mrb[14].mxu0 }
 0x85b   : > { %v2679_v25 = vpop.f32.mrb[15].mxu0 }
 0x85c   : > { %v2526_v25 = vld [vmem:[#allocation19] ss:$0 sm:$0xff] }
 0x85f   : > { %v1222_v26 = vpop.f32.mrb[8].mxu1 }
 0x860   : > { %v1272_v28 = vadd.f32 %v1271_v22, %v1222_v26  ;;  %v2672_v29 = vpop.f32.mrb[9].mxu1 }
 0x861   : > { %v1225_v30 = vpop.f32.mrb[10].mxu1 }
 0x862   : > { %v1284_v31 = vadd.f32 %v2513_v27, %v1272_v28  ;;  %v2673_v32 = vpop.f32.mrb[11].mxu1  ;;  %v2527_v27 = vld [vmem:[#allocation20] ss:$0 sm:$0xff] }
 0x864   : > { %v1285_v33 = vadd.f32 %v1284_v31, %v4044_v18  ;;  %v2954_v18 = vld [vmem:[%s4399_s10 + $0x8] sm:$0xff]   ;;  %v2532_v31 = vld [vmem:[#allocation10 + $0x1] ss:$0 sm:$0xff] }
 0x865   : > { %2683 = vmatpush3.bf16.msra.mxu1 %v2954_v18 }
 0x866   : > { %v1288_v34 = vsel %vm835_vm0, %v1285_v33, 0.0  ;;  %2700 = vmatprep.subr.bf16.mxu1 %v3484_v8 }
 0x867   : > { %1289 = vadd.xlane.f32.xlu1 %v1288_v34 }
 0x8f4   : > { %v1290_v35 = vpop.xlane.xlu1 %1289 }
 0x8f5   : > { %v1291_v36 = vmul.f32 0.03125, %v1290_v35 }
 0x8f7   : > { %v1292_v38 = vsub.f32 %v1285_v33, %v1291_v36 }
 0x8f9   : > { %v1293_v39 = vmul.f32 %v1292_v38, %v1292_v38 }
 0x8fb   : > { %v1294_v40 = vsel %vm835_vm0, %v1293_v39, 0.0 }
 0x8fc   : > { %1295 = vadd.xlane.f32.xlu0 %v1294_v40 }
 0x989   : > { %v1296_v42 = vpop.xlane.xlu0 %1295 }
 0x98a   : > { %v1297_v43 = vmul.f32 0.03125, %v1296_v42 }
 0x98c   : > { %v1298_v44 = vadd.f32 1e-12, %v1297_v43 }
 0x98e   : > { %2983 = vrsqrt.f32 %v1298_v44 }
 0x998   : > { %v2984_v45 = vpop.eup %2983 }
 0x999   : > { %v1300_v47 = vmul.f32 %v2984_v45, %v1292_v38 }
 0x99b   : > { %v1307_v49 = vmul.f32 %v2514_v46, %v1300_v47 }
 0x99d   : > { %v1314_v50 = vadd.f32 %v2515_v48, %v1307_v49 }
 0x99f   : > { %v1315_v51 = vpack.c.bf16 %v1314_v50, %v1314_v50 }
 0x9a1   : > { %2685 = vmatmul.mubr.msk.bf16.vlgmr.msra.gmra.mrb[12].mxu1 %vm835_vm0, %v1315_v51 }
 0x9a2   : > { %2704 = vmatprep.mubr.msk.bf16.mxu1 %vm3485_vm1, %v3484_v8  ;;  %2701 = vmatpush3.bf16.msra.mxu1 %v2959_v19  ;;  %v2961_v19 = vld [vmem:[%s4398_s5 + $0x10] sm:$0xff]  }
 0x9a3   : > { %2702 = vmatprep.subr.bf16.mxu1 %v3484_v8 }
 0x9a6   : > { %2703 = vmatpush3.bf16.msra.mxu1 %v2960_v20 }
 0x9a7   : > { %2708 = vmatprep.subr.bf16.mxu1 %v3484_v8 }
 0xa74   : > { %v1376_v57 = vpop.f32.mrb[12].mxu1 }
 0xa75   : > { %v1377_v58 = vadd.f32 %v2516_v56, %v1376_v57  ;;  %v2686_v59 = vpop.f32.mrb[13].mxu1 }
 0xa76   : > { %v1379_v60 = vpop.f32.mrb[14].mxu1 }
 0xa77   : > { %v1383_v61 = vmul.f32 0.70710677, %v1377_v58  ;;  %v2687_v62 = vpop.f32.mrb[15].mxu1  ;;  %v1382_v0 = vmul.f32 0.5, %v1377_v58 }
 0xa79   : > { %2985 = verf.f32 %v1383_v61 }
 0xa83   : > { %v2986_v63 = vpop.eup %2985 }
 0xa84   : > { %v1385_v1 = vadd.f32 1.0, %v2986_v63 }
 0xa86   : > { %v1386_v2 = vmul.f32 %v1385_v1, %v1382_v0 }
 0xa88   : > { %v1387_v3 = vpack.c.bf16 %v1386_v2, %v1386_v2 }
 0xa8a   : > { %2697 = vmatmul.mubr.msk.bf16.vlgmr.msra.gmra.mrb[16].mxu0 %vm1427_vm5, %v1387_v3 }
 0xa8b   : > { %2716 = vmatprep.mubr.msk.bf16.mxu0 %vm3485_vm1, %v3484_v8 }
 0xb5d   : > { %v1465_v5 = vpop.f32.mrb[16].mxu0 }
 0xb5e   : > { %v1466_v6 = vadd.f32 %v2520_v4, %v1465_v5  ;;  %v2698_v7 = vpop.f32.mrb[17].mxu0 }
 0xb5f   : > { %v1468_v9 = vpop.f32.mrb[18].mxu0 }
 0xb60   : > { %v2699_v10 = vpop.f32.mrb[19].mxu0  ;;  %v1471_v11 = vadd.f32 %v1466_v6, %v1314_v50 }
 0xb62   : > { %v1474_v12 = vsel %vm835_vm0, %v1471_v11, 0.0 }
 0xb63   : > { %1475 = vadd.xlane.f32.xlu1 %v1474_v12  ;;  %v2962_v12 = vld [vmem:[%s4398_s5 + $0x18] sm:$0xff]  }
 0xbf0   : > { %v1476_v13 = vpop.xlane.xlu1 %1475 }
 0xbf1   : > { %v1477_v14 = vmul.f32 0.03125, %v1476_v13 }
 0xbf3   : > { %v1478_v15 = vsub.f32 %v1471_v11, %v1477_v14 }
 0xbf5   : > { %v1479_v16 = vmul.f32 %v1478_v15, %v1478_v15 }
 0xbf7   : > { %v1480_v17 = vsel %vm835_vm0, %v1479_v16, 0.0 }
 0xbf8   : > { %1481 = vadd.xlane.f32.xlu1 %v1480_v17 }
 0xc85   : > { %v1482_v21 = vpop.xlane.xlu1 %1481 }
 0xc86   : > { %v1483_v22 = vmul.f32 0.03125, %v1482_v21 }
 0xc88   : > { %v1484_v23 = vadd.f32 1e-12, %v1483_v22 }
 0xc8a   : > { %2987 = vrsqrt.f32 %v1484_v23 }
 0xc94   : > { %v2988_v24 = vpop.eup %2987 }
 0xc95   : > { %v1486_v26 = vmul.f32 %v2988_v24, %v1478_v15 }
 0xc97   : > { %v1493_v28 = vmul.f32 %v2526_v25, %v1486_v26 }
 0xc99   : > { %v4144_v29 = vadd.f32 %v2527_v27, %v1493_v28 }
 0xc9b   : > { %v1501_v30 = vpack.c.bf16 %v4144_v29, %v4144_v29 }
 0xc9d   : > { %2705 = vmatmul.mubr.msk.bf16.vlgmr.msra.gmra.mrb[16].mxu1 %vm835_vm0, %v1501_v30 }
 0xc9e   : > { %2710 = vmatprep.mubr.msk.bf16.mxu1 %vm3485_vm1, %v3484_v8 }
 0xd70   : > { %v1564_v32 = vpop.f32.mrb[16].mxu1 }
 0xd71   : > { %v1565_v33 = vadd.f32 %v2532_v31, %v1564_v32  ;;  %v2706_v34 = vpop.f32.mrb[17].mxu1 }
 0xd72   : > { %v1567_v35 = vpop.f32.mrb[18].mxu1 }
 0xd73   : > { %1576 = vrot.lane.b32.xlu0 %v1565_v33, %s3486_s16  ;;  %v2707_v36 = vpop.f32.mrb[19].mxu1  ;;  %v1581_v38 = vpack.c.bf16 %v1565_v33, %v1565_v33  ;;  %v1570_v39 = vmul.f32 0.25, %v1565_v33 }
 0xd75   : > { %1584 = vrot.lane.b32.xlu1 %v1581_v38, %s3487_s8  ;;  %v1579_v43 = vpack.c.bf16 %v1570_v39, %v1570_v39 }
 0xd77   : > { %1572 = vrot.lane.b32.xlu0 %v1570_v39, %s3486_s16  ;;  %s4401_s16 = smov 64  }
 0xde5   : > { %v1577_v40 = vpop.permute.xlu0 %1576 }
 0xde6   : > { %v1582_v41 = vpack.c.bf16 %v1577_v40, %v1577_v40 }
 0xde7   : > { %v1585_v18 = vpop.permute.xlu1 %1584 }
 0xde8   : > { %v1590_v42 = vsel %vm954_vm2, %v1585_v18, 0  ;;  %1633 = vrot.lane.b32.xlu1 %v1582_v41, %s3487_s8  ;;  %s4402_s8 = sld [smem:[#allocation46_spill]] }
 0xde9   : > { %2709 = vmatpush3.bf16.xpose.msra.mxu1 %v1590_v42  ;;  %v1573_v46 = vpop.permute.xlu0 %1572 }
 0xdea   : > { %2720 = vmatprep.subr.bf16.mxu1 %v3484_v8  ;;  %v1580_v47 = vpack.c.bf16 %v1573_v46, %v1573_v46 }
 0xdf0   : > { %2711 = vmatmul.mubr.msk.bf16.vlgmr.msra.gmra.mrb[20].mxu1 %vm954_vm2, %v1579_v43 }
 0xdf1   : > { %2722 = vmatprep.mubr.msk.bf16.mxu1 %vm3485_vm1, %v3484_v8 }
 0xe5a   : > { %v1634_v44 = vpop.permute.xlu1 %1633 }
 0xe5b   : > { %v1639_v45 = vsel %vm954_vm2, %v1634_v44, 0 }
 0xe5c   : > { %2715 = vmatpush3.bf16.xpose.msra.mxu0 %v1639_v45 }
 0xe5d   : > { %2726 = vmatprep.subr.bf16.mxu0 %v3484_v8 }
 0xe63   : > { %2717 = vmatmul.mubr.msk.bf16.vlgmr.msra.gmra.mrb[20].mxu0 %vm954_vm2, %v1580_v47 }
 0xe64   : > { %2728 = vmatprep.mubr.msk.bf16.mxu0 %vm3485_vm1, %v3484_v8 }
 0xec3   : > { %v1626_v48 = vpop.f32.mrb[20].mxu1 }
 0xec4   : > { %v1627_v49 = vadd.f32 %v4067_v37, %v1626_v48  ;;  %v2712_v50 = vpop.f32.mrb[21].mxu1 }
 0xec5   : > { %v1629_v51 = vpop.f32.mrb[22].mxu1  ;;  %v2963_v50 = vld [vmem:[%s4399_s10 + $0x10] sm:$0xff]  }
 0xec6   : > { %v2713_v52 = vpop.f32.mrb[23].mxu1  ;;  %v1681_v53 = vsel %vm1050_vm3, %v1627_v49, -inf }
 0xec7   : > { %1682 = vmax.xlane.f32.xlu1 %v1681_v53 }
 0xf36   : > { %v1675_v54 = vpop.f32.mrb[20].mxu0 }
 0xf37   : > { %v1676_v55 = vadd.f32 %v4067_v37, %v1675_v54  ;;  %v2718_v56 = vpop.f32.mrb[21].mxu0 }
 0xf38   : > { %v1678_v57 = vpop.f32.mrb[22].mxu0 }
 0xf39   : > { %v2719_v58 = vpop.f32.mrb[23].mxu0  ;;  %v1684_v59 = vsel %vm1050_vm3, %v1676_v55, -inf  ;;  %v2550_v57 = vld [vmem:[#allocation14 + $0x1] ss:$0 sm:$0xff] }
 0xf3a   : > { %1685 = vmax.xlane.f32.xlu0 %v1684_v59 }
 0xf54   : > { %v1683_v60 = vpop.xlane.xlu1 %1682 }
 0xf55   : > { %v1687_v61 = vsub.f32 %v1627_v49, %v1683_v60 }
 0xf57   : > { %v1689_v62 = vmul.f32 1.442695, %v1687_v61  ;;  %v2965_v61 = vld [vmem:[%s4400_s29 + $0x20] sm:$0xff]  }
 0xf59   : > { %2989 = vpow2.f32 %v1689_v62  ;;  %v2966_v62 = vld [vmem:[%s4400_s29 + $0x28] sm:$0xff]  }
 0xf63   : > { %v2990_v63 = vpop.eup %2989 }
 0xf64   : > { %v1693_v0 = vsel %vm1050_vm3, %v2990_v63, 0.0 }
 0xf65   : > { %1694 = vadd.xlane.f32.xlu0 %v1693_v0  ;;  %v2968_v0 = vld [vmem:[%s4400_s29 + $0x38] sm:$0xff]  }
 0xf7b   : > { %1705 = vrot.lane.b32.xlu0 %v1581_v38, %s4401_s16  ;;  %v2548_v38 = vld [vmem:[#allocation11 + $0x1] ss:$0 sm:$0xff] }
 0xfc7   : > { %v1686_v1 = vpop.xlane.xlu0 %1685 }
 0xfc8   : > { %v1688_v2 = vsub.f32 %v1676_v55, %v1686_v1  ;;  %v2549_v55 = vld [vmem:[#allocation13 + $0x1] ss:$0 sm:$0xff]  ;;  %v2555_v1 = vld [vmem:[#allocation16 + $0x1] ss:$0 sm:$0xff] }
 0xfca   : > { %v1691_v3 = vmul.f32 1.442695, %v1688_v2 }
 0xfcc   : > { %2991 = vpow2.f32 %v1691_v3 }
 0xfd6   : > { %v2992_v37 = vpop.eup %2991 }
 0xfd7   : > { %v1696_v4 = vsel %vm1050_vm3, %v2992_v37, 0.0 }
 0xfd8   : > { %1697 = vadd.xlane.f32.xlu1 %v1696_v4 }
 0xfe9   : > { %1753 = vrot.lane.b32.xlu1 %v1582_v41, %s4401_s16  ;;  %s2264_s16 = scalar_lea.sflag [#allocation4], %s3990_s6 }
 0xff2   : > { %v1695_v5 = vpop.xlane.xlu0 %1694 }
 0xff3   : > { %2993 = vrcp.f32 %v1695_v5 }
 0xff6   : > { %v1706_v6 = vpop.permute.xlu0 %1705 }
 0xff7   : > { %v1711_v7 = vsel %vm1080_vm4, %v1706_v6, 0 }
 0xff8   : > { %2721 = vmatpush3.bf16.msra.mxu1 %v1711_v7 }
 0xff9   : > { %2732 = vmatprep.subr.bf16.mxu1 %v3484_v8 }
 0xffd   : > { %v2994_v9 = vpop.eup %2993 }
 0xffe   : > { %v1701_v10 = vmul.f32 %v2994_v9, %v2990_v63  ;;  %v2967_v63 = vld [vmem:[%s4400_s29 + $0x30] sm:$0xff]  }
0x1000   : > { %v1703_v11 = vpack.c.bf16 %v1701_v10, %v1701_v10 }
0x1002   : > { %2723 = vmatmul.mubr.msk.bf16.vlgmr.msra.gmra.mrb[24].mxu1 %vm1050_vm3, %v1703_v11 }
0x1003   : > { %2734 = vmatprep.mubr.msk.bf16.mxu1 %vm3485_vm1, %v3484_v8  ;;  %2733 = vmatpush3.bf16.msra.mxu1 %v2962_v12 }
0x1004   : > { %2744 = vmatprep.subr.bf16.mxu1 %v3484_v8 }
0x1065   : > { %v1698_v13 = vpop.xlane.xlu1 %1697 }
0x1066   : > { %2995 = vrcp.f32 %v1698_v13  ;;  %v2567_v13 = vld [vmem:[#allocation17 + $0x1] ss:$0 sm:$0xff] }
0x1069   : > { %v1754_v14 = vpop.permute.xlu1 %1753 }
0x106a   : > { %v1759_v15 = vsel %vm1080_vm4, %v1754_v14, 0 }
0x106b   : > { %2727 = vmatpush3.bf16.msra.mxu0 %v1759_v15 }
0x106c   : > { %2738 = vmatprep.subr.bf16.mxu0 %v3484_v8 }
0x1070   : > { %v2996_v16 = vpop.eup %2995 }
0x1071   : > { %v1702_v17 = vmul.f32 %v2996_v16, %v2992_v37 }
0x1073   : > { %v1704_v20 = vpack.c.bf16 %v1702_v17, %v1702_v17 }
0x1075   : > { %2729 = vmatmul.mubr.msk.bf16.vlgmr.msra.gmra.mrb[24].mxu0 %vm1050_vm3, %v1704_v20 }
0x1076   : > { %2739 = vmatpush3.bf16.msra.mxu0 %v2961_v19  ;;  %2740 = vmatprep.mubr.msk.bf16.mxu0 %vm3485_vm1, %v3484_v8 }
0x1077   : > { %2752 = vmatprep.subr.bf16.mxu0 %v3484_v8 }
0x10d5   : > { %v1747_v21 = vpop.f32.mrb[24].mxu1 }
0x10d6   : > { %v1801_v22 = vpack.c.bf16 %v1747_v21, %v1747_v21  ;;  %v2724_v23 = vpop.f32.mrb[25].mxu1 }
0x10d7   : > { %v1750_v24 = vpop.f32.mrb[26].mxu1 }
0x10d8   : > { %v2725_v25 = vpop.f32.mrb[27].mxu1  ;;  %2741 = vmatmul.mubr.msk.bf16.vlgmr.msra.gmra.mrb[28].mxu0 %vm954_vm2, %v1801_v22 }
0x10d9   : > { %2760 = vmatprep.mubr.msk.bf16.mxu0 %vm3485_vm1, %v3484_v8  ;;  %2753 = vmatpush3.bf16.msra.mxu0 %v2965_v61 }
0x10da   : > { %2754 = vmatprep.subr.bf16.mxu0 %v3484_v8 }
0x10dd   : > { %2755 = vmatpush3.bf16.msra.mxu0 %v2966_v62 }
0x10de   : > { %2756 = vmatprep.subr.bf16.mxu0 %v3484_v8 }
0x10e1   : > { %2757 = vmatpush3.bf16.msra.mxu0 %v2967_v63 }
0x10e2   : > { %2758 = vmatprep.subr.bf16.mxu0 %v3484_v8 }
0x10e5   : > { %2759 = vmatpush3.bf16.msra.mxu0 %v2968_v0 }
0x1148   : > { %v1795_v26 = vpop.f32.mrb[24].mxu0 }
0x1149   : > { %v1805_v27 = vpack.c.bf16 %v1795_v26, %v1795_v26  ;;  %v2730_v28 = vpop.f32.mrb[25].mxu0 }
0x114a   : > { %v1798_v30 = vpop.f32.mrb[26].mxu0  ;;  %v2970_v28 = vld [vmem:[%s4402_s8 + $0x8] sm:$0xff]  }
0x114b   : > { %v2731_v31 = vpop.f32.mrb[27].mxu0  ;;  %2735 = vmatmul.mubr.msk.bf16.vlgmr.msra.gmra.mrb[28].mxu1 %vm954_vm2, %v1805_v27  ;;  %v2969_v27 = vld [vmem:[%s4402_s8] sm:$0xff]  }
0x114c   : > { %2748 = vmatprep.mubr.msk.bf16.mxu1 %vm3485_vm1, %v3484_v8  ;;  %2745 = vmatpush3.bf16.msra.mxu1 %v2963_v50 }
0x114d   : > { %2746 = vmatprep.subr.bf16.mxu1 %v3484_v8 }
0x11ab   : > { %v1901_v32 = vpop.f32.mrb[28].mxu0 }
0x11ac   : > { %v2742_v33 = vpop.f32.mrb[29].mxu0 }
0x11ad   : > { %v1904_v34 = vpop.f32.mrb[30].mxu0 }
0x11ae   : > { %v2743_v35 = vpop.f32.mrb[31].mxu0  ;;  %v2573_v34 = vld [vmem:[#allocation19 + $0x1] ss:$0 sm:$0xff] }
0x121e   : > { %v1852_v36 = vpop.f32.mrb[28].mxu1 }
0x121f   : > { %v1902_v39 = vadd.f32 %v1901_v32, %v1852_v36  ;;  %v2736_v40 = vpop.f32.mrb[29].mxu1  ;;  %v2574_v36 = vld [vmem:[#allocation20 + $0x1] ss:$0 sm:$0xff] }
0x1220   : > { %v1855_v41 = vpop.f32.mrb[30].mxu1 }
0x1221   : > { %v1915_v18 = vadd.f32 %v2548_v38, %v1902_v39  ;;  %v2737_v42 = vpop.f32.mrb[31].mxu1  ;;  %v2971_v41 = vld [vmem:[%s4403_s7] sm:$0xff]  }
0x1222   : > { %v2144_v42 = vld [vmem:[#allocation22] sm:$0x1] }
0x1223   : > { %v1916_v43 = vadd.f32 %v1915_v18, %v4144_v29  ;;  %v2964_v29 = vld [vmem:[%s4399_s10 + $0x18] sm:$0xff]   ;;  %v2972_v18 = vld [vmem:[%s4403_s7 + $0x8] sm:$0xff]   ;;  %s4405_s7 = sld [smem:[#allocation49_spill]] }
0x1224   : > { %2747 = vmatpush3.bf16.msra.mxu1 %v2964_v29 }
0x1225   : > { %v1921_v44 = vsel %vm835_vm0, %v1916_v43, 0.0  ;;  %2764 = vmatprep.subr.bf16.mxu1 %v3484_v8 }
0x1226   : > { %1922 = vadd.xlane.f32.xlu1 %v1921_v44 }
0x1229   : > { %s4256_s8 = scalar_lea.hbm %s4405_s7, %s2581_s0 }
0x12b3   : > { %v1923_v45 = vpop.xlane.xlu1 %1922 }
0x12b4   : > { %v1924_v46 = vmul.f32 0.03125, %v1923_v45 }
0x12b6   : > { %v1925_v47 = vsub.f32 %v1916_v43, %v1924_v46 }
0x12b8   : > { %v1926_v48 = vmul.f32 %v1925_v47, %v1925_v47 }
0x12ba   : > { %v1927_v49 = vsel %vm835_vm0, %v1926_v48, 0.0 }
0x12bb   : > { %1928 = vadd.xlane.f32.xlu0 %v1927_v49 }
0x1348   : > { %v1929_v51 = vpop.xlane.xlu0 %1928 }
0x1349   : > { %v1930_v52 = vmul.f32 0.03125, %v1929_v51 }
0x134b   : > { %v1931_v53 = vadd.f32 1e-12, %v1930_v52 }
0x134d   : > { %2997 = vrsqrt.f32 %v1931_v53 }
0x1357   : > { %v2998_v54 = vpop.eup %2997 }
0x1358   : > { %v1933_v56 = vmul.f32 %v2998_v54, %v1925_v47 }
0x135a   : > { %v1940_v58 = vmul.f32 %v2549_v55, %v1933_v56 }
0x135c   : > { %v1947_v59 = vadd.f32 %v2550_v57, %v1940_v58 }
0x135e   : > { %v1948_v60 = vpack.c.bf16 %v1947_v59, %v1947_v59 }
0x1360   : > { %2749 = vmatmul.mubr.msk.bf16.vlgmr.msra.gmra.mrb[32].mxu1 %vm835_vm0, %v1948_v60 }
0x1361   : > { %2768 = vmatprep.mubr.msk.bf16.mxu1 %vm3485_vm1, %v3484_v8  ;;  %2765 = vmatpush3.bf16.msra.mxu1 %v2969_v27 }
0x1362   : > { %2766 = vmatprep.subr.bf16.mxu1 %v3484_v8 }
0x1365   : > { %2767 = vmatpush3.bf16.msra.mxu1 %v2970_v28 }
0x1366   : > { %2772 = vmatprep.subr.bf16.mxu1 %v3484_v8 }
0x1433   : > { %v2011_v2 = vpop.f32.mrb[32].mxu1 }
0x1434   : > { %v2012_v3 = vadd.f32 %v2555_v1, %v2011_v2  ;;  %v2750_v37 = vpop.f32.mrb[33].mxu1 }
0x1435   : > { %v2014_v4 = vpop.f32.mrb[34].mxu1 }
0x1436   : > { %v2018_v5 = vmul.f32 0.70710677, %v2012_v3  ;;  %v2751_v6 = vpop.f32.mrb[35].mxu1  ;;  %v2017_v9 = vmul.f32 0.5, %v2012_v3 }
0x1438   : > { %2999 = verf.f32 %v2018_v5 }
0x1442   : > { %v3000_v7 = vpop.eup %2999 }
0x1443   : > { %v2020_v10 = vadd.f32 1.0, %v3000_v7 }
0x1445   : > { %v2021_v11 = vmul.f32 %v2020_v10, %v2017_v9 }
0x1447   : > { %v2022_v12 = vpack.c.bf16 %v2021_v11, %v2021_v11 }
0x1449   : > { %2761 = vmatmul.mubr.msk.bf16.vlgmr.msra.gmra.mrb[32].mxu0 %vm1427_vm5, %v2022_v12 }
0x151c   : > { %v2101_v14 = vpop.f32.mrb[32].mxu0 }
0x151d   : > { %v2102_v15 = vadd.f32 %v2567_v13, %v2101_v14  ;;  %v2762_v16 = vpop.f32.mrb[33].mxu0 }
0x151e   : > { %v2104_v17 = vpop.f32.mrb[34].mxu0 }
0x151f   : > { %v2763_v19 = vpop.f32.mrb[35].mxu0  ;;  %v2107_v20 = vadd.f32 %v2102_v15, %v1947_v59 }
0x1521   : > { %v2112_v21 = vsel %vm835_vm0, %v2107_v20, 0.0 }
0x1522   : > { %2113 = vadd.xlane.f32.xlu0 %v2112_v21 }
0x15af   : > { %v2114_v22 = vpop.xlane.xlu0 %2113 }
0x15b0   : > { %v2115_v23 = vmul.f32 0.03125, %v2114_v22 }
0x15b2   : > { %v2116_v24 = vsub.f32 %v2107_v20, %v2115_v23 }
0x15b4   : > { %v2117_v25 = vmul.f32 %v2116_v24, %v2116_v24 }
0x15b6   : > { %v2118_v26 = vsel %vm835_vm0, %v2117_v25, 0.0 }
0x15b7   : > { %2119 = vadd.xlane.f32.xlu1 %v2118_v26 }
0x1644   : > { %v2120_v30 = vpop.xlane.xlu1 %2119 }
0x1645   : > { %v2121_v31 = vmul.f32 0.03125, %v2120_v30 }
0x1647   : > { %v2122_v32 = vadd.f32 1e-12, %v2121_v31 }
0x1649   : > { %3001 = vrsqrt.f32 %v2122_v32 }
0x1653   : > { %v3002_v33 = vpop.eup %3001 }
0x1654   : > { %v2124_v35 = vmul.f32 %v3002_v33, %v2116_v24 }
0x1656   : > { %v2131_v38 = vmul.f32 %v2573_v34, %v2124_v35 }
0x1658   : > { %v2138_v39 = vadd.f32 %v2574_v36, %v2131_v38 }
0x165a   : > { %v2139_v40 = vpack.c.bf16 %v2138_v39, %v2138_v39 }
0x165c   : > { %2769 = vmatmul.mubr.msk.bf16.vlgmr.msra.gmra.mrb[36].mxu1 %vm835_vm0, %v2139_v40 }
0x165d   : > { %2776 = vmatprep.mubr.msk.bf16.mxu1 %vm3485_vm1, %v3484_v8  ;;  %2773 = vmatpush3.bf16.msra.mxu1 %v2971_v41 }
0x165e   : > { %2774 = vmatprep.subr.bf16.mxu1 %v3484_v8  ;;  %v2206_v8 = vld [vmem:[%s4404_s30] sm:$0x1]  ;;  %s3377_s30 = sshll.u32 %s3489_s21, 4  ;;  %s3378_s30 = int_to_ptr.vmem [resolvable:$false] %s3377_s30 }
0x165f   : > { %s3379_s5 = scalar_lea.vmem %s3378_s30, 32  ;;  %p3380_p10 = scmp.lt.s32.totalorder %s4258_s18, %s3378_s30 }
0x1660   : > { %p3381_p4 = scmp.lt.s32.totalorder %s3379_s5, %s3373_s27 }
0x1661   : > { %2775 = vmatpush3.bf16.msra.mxu1 %v2972_v18 }
0x1662   : > { %p3382_p1 = por %p3381_p4, %p3380_p10 }
0x1664   : > { %p3383_p13 = pnand %p3382_p1, %p3376_p12 }
0x172f   : > { %v2194_v43 = vpop.f32.mrb[36].mxu1 }
0x1730   : > { %v2195_v44 = vadd.f32 %v2194_v43, %v2144_v42  ;;  %v2770_v45 = vpop.f32.mrb[37].mxu1 }
0x1731   : > { %v2197_v46 = vpop.f32.mrb[38].mxu1 }
0x1732   : > { %3003 = vtanh.f32 %v2195_v44  ;;  %v2771_v47 = vpop.f32.mrb[39].mxu1 }
0x173c   : > { %v3004_v48 = vpop.eup %3003 }
0x173d   : > { %v2201_v49 = vpack.c.bf16 %v3004_v48, %v3004_v48 }
0x173f   : > { %2777 = vmatmul.mubr.msk.bf16.vlgmr.msra.gmra.mrb[40].mxu1 %vm835_vm0, %v2201_v49 }
0x1812   : > { %v2256_v50 = vpop.f32.mrb[40].mxu1 }
0x1813   : > { %v2257_v29 = vadd.f32 %v2256_v50, %v2206_v8  ;;  %v2778_v51 = vpop.f32.mrb[41].mxu1 }
0x1814   : > { %v2259_v52 = vpop.f32.mrb[42].mxu1 }
0x1815   : > { %2262 = vst [vmem:[%s830_s3] sm:$0x1] %v2257_v29  ;;  %v2779_v53 = vpop.f32.mrb[43].mxu1 }
0x1816   : > { %3386 = shalt.err (!%p3383_p13)
}
0x1817   : > { %s3387_s6 = scalar_lea.hbm %s4256_s8, 16  ;;  %s3391_s12 = scalar_lea.hbm %s4405_s7, 32 }
0x1818   : > { %p3388_p0 = scmp.ne.s32.totalorder %s4256_s8, %s3387_s6  ;;  %p3392_p11 = scmp.lt.u32.totalorder %s4256_s8, %s4405_s7 }
0x1819   : > { %p3393_p5 = scmp.lt.u32.totalorder %s3391_s12, %s3387_s6  ;;  %p3395_p3 = scmp.lt.u32.totalorder %s3387_s6, %s4256_s8 }
0x181a   : > { %p3389_p2 = pnand %p3388_p0, %p4406_p8 }
0x181b   : > { %p3394_p9 = por %p3393_p5, %p3392_p11 }
0x181c   : > { %p3390_p6 = pneg %p3389_p2 }
0x181d   : > { %p3396_p7 = por %p3395_p3, %p3394_p9 }
0x181f   : > { %p3397_p12 = pnand %p3396_p7, %p3390_p6 }
0x1821   : > { %3400 = shalt.err (!%p3397_p12)
}
0x1822   : > { %2828 = dma.vmem_to_hbm [thread:$0]  (%p4406_p8), %s4258_s18, 16, %s4256_s8, %s2264_s16  }
0x1823 PF: > { %s2288_s27 = sand.u32 1, %s3455_s1   ;;  %p4407_p10 = scmp.ne.s32.totalorder %s4376_s28, 0 }
0x1824   : > { %p4408_p4 = scmp.ge.s32.totalorder %s3467_s24, 2  ;;  %s2289_s5 = scalar_lea.sflag [#allocation4], %s2288_s27 }
0x1826   : > { %p2872_p1 = pnand %p4408_p4, %p4407_p10 }
0x1828   : > { %3450 = dma.done.wait (!%p2872_p1), %s2289_s5, 16  }
0x1829   : > { %3452 = vsyncadd (!%p2872_p1), %s2289_s5, 4294967280  ;;  %p41_p13 = scmp.ge.s32.totalorder %s3887_s4, 4   ;;  %s4409_s1 = smov %s3459_s22 }
0x182a   : > { %s4410_s22 = smov %s3463_s23  ;;  %s4411_s23 = smov %s3899_s19 }
0x182b   : > { %s4412_s24 = smov %s3887_s4  ;;  %43 = sbr.rel (!%p41_p13) target bundleno = 28 (0x1c), region = 216 }
0x1832   :  { %2293 = vsyncpa [#allocation3], 1 }
0x1833   :  { %2295 = vsyncpa [#allocation3 + $0x1], 1 }
0x1834   :  { %2296 = vsyncpa [#allocation6], 1 }
0x1835   :  { %2298 = vsyncpa [#allocation6 + $0x1], 1 }
0x1836   :  { %2299 = vsyncpa [#allocation9], 1 }
0x1837   :  { %2300 = vsyncpa [#allocation12], 1 }
0x1838   :  { %2301 = vsyncpa [#allocation15], 1 }
0x1839   :  { %2302 = vsyncpa [#allocation18], 1 }
0x183a   :  { %2303 = vsyncpa [#allocation21], 1 }
0x183b   :  { %2304 = vsyncpa [#allocation4], 1 }
0x183c   :  { %2306 = vsyncpa [#allocation4 + $0x1], 1 }

</bundles_post_ra>
